<compile_context>
chip_gen: v6e
topology: v6e:2x2x1
jax: 0.10.0
libtpu: 0.0.40
codegen_flags: <defaults>
</compile_context>

<pallas_src>
import jax
import jax.numpy as jnp
from jax import lax
from jax.experimental import pallas as pl
from jax.experimental.pallas import tpu as pltpu

# ----------------------------- model dims (small) -----------------------------
B = 2          # batch
S = 8          # sequence length
D = 32         # d_model
H = 4          # num_heads
DK = D // H    # head dim
DFF = 64       # d_ff
HB = H * B     # heads folded into batch
LN_EPS = 1e-5
NEG_INF = -1e9


def _layernorm(v, gamma, beta, eps=LN_EPS):
    mu = jnp.mean(v, axis=-1, keepdims=True)
    var = jnp.mean((v - mu) ** 2, axis=-1, keepdims=True)
    return (v - mu) * lax.rsqrt(var + eps) * gamma + beta


# --------------------------------- kernel ------------------------------------
def encoder_kernel(
    x_ref,       # [B, S, D]          activations
    mask_ref,    # [B, 1, S]          1.0 = valid token, 0.0 = padding
    wqkv_ref,    # [3*H*B, DK, D]     per-(tensor, head) QKV weights, contract-last
    bqkv_ref,    # [3*H*B, 1, DK]     per-(tensor, head) QKV biases
    wo_ref,      # [H*B, D, DK]       per-head W_o slices, contract-last
    w1_ref,      # [D, DFF]
    w2_ref,      # [DFF, D]
    slab_ref,    # [8, 128]           row0: bo|b2|b1 ; rows1-4: g1, be1, g2, be2
    out_ref,     # [B*S, D]
):
    x3 = x_ref[...]                          # [B, S, D]
    x2 = x3.reshape(B * S, D)                # tile-aligned collapse (8-row slabs)

    # ---- unpack the single-vreg parameter slab ----
    slab = slab_ref[...]
    bo = slab[0:1, 0:D]
    b2 = slab[0:1, D:2 * D]
    b1 = slab[0:1, 2 * D:2 * D + DFF]
    g1, be1 = slab[1:2, 0:D], slab[2:3, 0:D]
    g2, be2 = slab[3:4, 0:D], slab[4:5, 0:D]

    # ---- additive mask bias, computed once, already head-batched: [(h,b), 1, S] ----
    bias = jnp.where(mask_ref[...] > 0.0, 0.0, jnp.float32(NEG_INF))       # [B, 1, S]
    bias_n = jnp.broadcast_to(bias[None], (H, B, 1, S)).reshape(HB, 1, S)

    # ---- QKV projection: heads folded into the batch dim of one batched einsum ----
    # x_n[(t,h,b), s, d] = x[b, s, d]  (leading-dim broadcast only)
    x_n = jnp.broadcast_to(x3[None], (3 * H, B, S, D)).reshape(3 * HB, S, D)
    qkv = jnp.einsum("nsd,ned->nse", x_n, wqkv_ref[...],
                     preferred_element_type=jnp.float32) + bqkv_ref[...]   # [(t,h,b), S, DK]

    q = qkv[0 * HB:1 * HB]                   # [(h,b), S, DK]  -- leading-dim slices (free)
    k = qkv[1 * HB:2 * HB]
    v = qkv[2 * HB:3 * HB]

    # ---- attention: one batched score matmul, one batched softmax ----
    scale = 1.0 / jnp.sqrt(jnp.float32(DK))
    s = jnp.einsum("nqd,nkd->nqk", q, k,
                   preferred_element_type=jnp.float32) * scale + bias_n    # [(h,b), S, S]
    s = s - jnp.max(s, axis=-1, keepdims=True)
    p = jnp.exp(s)
    p = p * pl.reciprocal(jnp.sum(p, axis=-1, keepdims=True), approx=True)

    av = jnp.einsum("nqk,nkd->nqd", p, v,
                    preferred_element_type=jnp.float32)                    # [(h,b), S, DK]

    # ---- output projection: batched per-head W_o matmul, then head-sum ----
    z_n = jnp.einsum("nsk,ndk->nsd", av, wo_ref[...],
                     preferred_element_type=jnp.float32)                   # [(h,b), S, D]
    attn3 = z_n[0:B]                                                       # head 0 (no zeros init)
    for h in range(1, H):
        attn3 = attn3 + z_n[h * B:(h + 1) * B]                             # [B, S, D]

    z = attn3.reshape(B * S, D) + bo
    # dropout1: identity (eval)
    h1 = _layernorm(z + x2, g1, be1)

    # ---- FFN over the whole batch at once ----
    f = jnp.dot(h1, w1_ref[...], preferred_element_type=jnp.float32) + b1
    f = jnp.maximum(f, 0.0)
    f = jnp.dot(f, w2_ref[...], preferred_element_type=jnp.float32) + b2
    # dropout2: identity (eval)

    out_ref[...] = _layernorm(f + h1, g2, be2).astype(out_ref.dtype)


# --------------------------------- wrapper ------------------------------------
def encoder_forward(x, padding_mask, params):
    """x: [B, S, D] f32, padding_mask: [B, 1, S] f32 (1 = valid)."""
    (wq, bq, wk, bk, wv, bv, wo, bo, g1, be1, w1, b1, w2, b2, g2, be2) = params

    # ---- wrapper-side layout plumbing (free; runs once in XLA) ----
    # Per-(tensor, head) QKV weight slices in contract-last form, replicated over batch
    # so the kernel's batched einsum needs no in-kernel reshuffling of heads.
    w_cat = jnp.concatenate([wq, wk, wv], axis=1)                  # [D, 3D]
    w_t = w_cat.T.reshape(3, H, DK, D)                             # [t, h, DK, D]
    wqkv_n = jnp.broadcast_to(w_t[:, :, None], (3, H, B, DK, D)).reshape(3 * HB, DK, D)

    b_cat = jnp.concatenate([bq, bk, bv], axis=0)                  # [3, D]
    b_t = b_cat.reshape(3, H, DK)
    bqkv_n = jnp.broadcast_to(b_t[:, :, None], (3, H, B, DK)).reshape(3 * HB, 1, DK)

    wo_t = jnp.transpose(wo.reshape(H, DK, D), (0, 2, 1))          # [H, D, DK]
    wo_n = jnp.broadcast_to(wo_t[:, None], (H, B, D, DK)).reshape(HB, D, DK)

    # One padded [8, 128] slab (one f32 vreg tile) holding all remaining small params.
    slab = jnp.zeros((8, 128), jnp.float32)
    slab = slab.at[0, 0:D].set(bo[0])
    slab = slab.at[0, D:2 * D].set(b2[0])
    slab = slab.at[0, 2 * D:2 * D + DFF].set(b1[0])
    slab = slab.at[1, 0:D].set(g1[0])
    slab = slab.at[2, 0:D].set(be1[0])
    slab = slab.at[3, 0:D].set(g2[0])
    slab = slab.at[4, 0:D].set(be2[0])

    vmem = lambda: pl.BlockSpec(memory_space=pltpu.MemorySpace.VMEM)
    out = pl.pallas_call(
        encoder_kernel,
        out_shape=jax.ShapeDtypeStruct((B * S, D), jnp.float32),
        in_specs=[vmem() for _ in range(8)],   # whole arrays, explicitly VMEM-resident
        out_specs=vmem(),
        # No grid: single invocation; total VMEM footprint is a few hundred KB.
    )(x, padding_mask, wqkv_n, bqkv_n, wo_n, w1, w2, slab)
    return out.reshape(B, S, D)


# ----------------------------- pure-JAX reference -----------------------------
def encoder_reference(x, padding_mask, params):
    (wq, bq, wk, bk, wv, bv, wo, bo, g1, be1, w1, b1, w2, b2, g2, be2) = params
    q = x @ wq + bq
    k = x @ wk + bk
    v = x @ wv + bv
    qh = q.reshape(B, S, H, DK).transpose(0, 2, 1, 3)
    kh = k.reshape(B, S, H, DK).transpose(0, 2, 1, 3)
    vh = v.reshape(B, S, H, DK).transpose(0, 2, 1, 3)
    s = jnp.einsum("bhqd,bhkd->bhqk", qh, kh) / jnp.sqrt(jnp.float32(DK))
    s = jnp.where(padding_mask[:, None, :, :] > 0.0, s, NEG_INF)
    p = jax.nn.softmax(s, axis=-1)
    attn = jnp.einsum("bhqk,bhkd->bhqd", p, vh).transpose(0, 2, 1, 3).reshape(B, S, D)
    z = attn @ wo + bo
    h1 = _layernorm(z + x, g1, be1)
    f = jnp.maximum(h1 @ w1 + b1, 0.0) @ w2 + b2
    return _layernorm(f + h1, g2, be2)


# ----------------------------- param init -----------------------------
def init_params(key):
    keys = jax.random.split(key, 8)

    def lin(k, din, dout):
        kw, kb = jax.random.split(k)
        w = jax.random.normal(kw, (din, dout), jnp.float32) * (1.0 / jnp.sqrt(din))
        b = jax.random.normal(kb, (1, dout), jnp.float32) * 0.1
        return w, b

    wq, bq = lin(keys[0], D, D)
    wk, bk = lin(keys[1], D, D)
    wv, bv = lin(keys[2], D, D)
    wo, bo = lin(keys[3], D, D)
    w1, b1 = lin(keys[4], D, DFF)
    w2, b2 = lin(keys[5], DFF, D)
    g1 = 1.0 + 0.1 * jax.random.normal(keys[6], (1, D), jnp.float32)
    be1 = 0.1 * jax.random.normal(keys[6], (1, D), jnp.float32)
    g2 = 1.0 + 0.1 * jax.random.normal(keys[7], (1, D), jnp.float32)
    be2 = 0.1 * jax.random.normal(keys[7], (1, D), jnp.float32)
    return (wq, bq, wk, bk, wv, bv, wo, bo, g1, be1, w1, b1, w2, b2, g2, be2)


if __name__ == "__main__":
    key = jax.random.PRNGKey(0)
    kx, kp = jax.random.split(key)
    x = jax.random.normal(kx, (B, S, D), jnp.float32)
    # padding mask: last 2 tokens of batch element 1 are padding.
    mask = jnp.ones((B, 1, S), jnp.float32)
    mask = mask.at[1, 0, -2:].set(0.0)
    params = init_params(kp)

    out = encoder_forward(x, mask, params)
    out = jax.block_until_ready(out)

    ref = encoder_reference(x, mask, params)
    assert out.shape == (B, S, D)
    err = float(jnp.max(jnp.abs(out - ref)))
    # Tolerance covers the EUP approximate reciprocal in the softmax denominator
    # (pl.reciprocal(approx=True)); eval-mode inference only.
    assert jnp.allclose(out, ref, atol=5e-3, rtol=5e-3), f"max abs err {err}"
    print("KERNEL_OK")
</pallas_src>

<mosaic_0001>
module attributes {stable_mosaic.version = 11 : i64} {
  func.func @encoder_kernel(%arg0: memref<2x8x32xf32, #tpu.memory_space<vmem>>, %arg1: memref<2x1x8xf32, #tpu.memory_space<vmem>>, %arg2: memref<24x8x32xf32, #tpu.memory_space<vmem>>, %arg3: memref<24x1x8xf32, #tpu.memory_space<vmem>>, %arg4: memref<8x32x8xf32, #tpu.memory_space<vmem>>, %arg5: memref<32x64xf32, #tpu.memory_space<vmem>>, %arg6: memref<64x32xf32, #tpu.memory_space<vmem>>, %arg7: memref<8x128xf32, #tpu.memory_space<vmem>>, %arg8: memref<16x32xf32, #tpu.memory_space<vmem>>) attributes {dimension_semantics = [], scalar_prefetch = 0 : i64, scratch_operands = 0 : i64, tpu.core_type = #tpu.core_type<tc>} {
    %c0 = arith.constant 0 : index
    %c0_0 = arith.constant 0 : index
    %c0_1 = arith.constant 0 : index
    %0 = vector.load %arg0[%c0, %c0_0, %c0_1] : memref<2x8x32xf32, #tpu.memory_space<vmem>>, vector<2x8x32xf32>
    %1 = vector.shape_cast %0 : vector<2x8x32xf32> to vector<16x32xf32>
    %c0_2 = arith.constant 0 : index
    %c0_3 = arith.constant 0 : index
    %2 = vector.load %arg7[%c0_2, %c0_3] : memref<8x128xf32, #tpu.memory_space<vmem>>, vector<8x128xf32>
    %3 = vector.extract_strided_slice %2 {offsets = [0, 0], sizes = [1, 32], strides = [1, 1]} : vector<8x128xf32> to vector<1x32xf32>
    %4 = vector.extract_strided_slice %2 {offsets = [0, 32], sizes = [1, 32], strides = [1, 1]} : vector<8x128xf32> to vector<1x32xf32>
    %5 = vector.extract_strided_slice %2 {offsets = [0, 64], sizes = [1, 64], strides = [1, 1]} : vector<8x128xf32> to vector<1x64xf32>
    %6 = vector.extract_strided_slice %2 {offsets = [1, 0], sizes = [1, 32], strides = [1, 1]} : vector<8x128xf32> to vector<1x32xf32>
    %7 = vector.extract_strided_slice %2 {offsets = [2, 0], sizes = [1, 32], strides = [1, 1]} : vector<8x128xf32> to vector<1x32xf32>
    %8 = vector.extract_strided_slice %2 {offsets = [3, 0], sizes = [1, 32], strides = [1, 1]} : vector<8x128xf32> to vector<1x32xf32>
    %9 = vector.extract_strided_slice %2 {offsets = [4, 0], sizes = [1, 32], strides = [1, 1]} : vector<8x128xf32> to vector<1x32xf32>
    %c0_4 = arith.constant 0 : index
    %c0_5 = arith.constant 0 : index
    %c0_6 = arith.constant 0 : index
    %10 = vector.load %arg1[%c0_4, %c0_5, %c0_6] : memref<2x1x8xf32, #tpu.memory_space<vmem>>, vector<2x1x8xf32>
    %cst = arith.constant 0.000000e+00 : f32
    %11 = vector.broadcast %cst : f32 to vector<2x1x8xf32>
    %12 = arith.cmpf ogt, %10, %11 : vector<2x1x8xf32>
    %cst_7 = arith.constant 0.000000e+00 : f32
    %cst_8 = arith.constant -1.000000e+09 : f32
    %13 = vector.broadcast %cst_7 : f32 to vector<2x1x8xf32>
    %14 = vector.broadcast %cst_8 : f32 to vector<2x1x8xf32>
    %15 = arith.select %12, %13, %14 : vector<2x1x8xi1>, vector<2x1x8xf32>
    %16 = vector.shape_cast %15 : vector<2x1x8xf32> to vector<1x2x1x8xf32>
    %17 = vector.shape_cast %16 : vector<1x2x1x8xf32> to vector<1x2x1x8xf32>
    %18 = vector.broadcast %17 : vector<1x2x1x8xf32> to vector<4x2x1x8xf32>
    %19 = vector.shape_cast %18 : vector<4x2x1x8xf32> to vector<8x1x8xf32>
    %20 = vector.shape_cast %0 : vector<2x8x32xf32> to vector<1x2x8x32xf32>
    %21 = vector.shape_cast %20 : vector<1x2x8x32xf32> to vector<1x2x8x32xf32>
    %22 = vector.broadcast %21 : vector<1x2x8x32xf32> to vector<12x2x8x32xf32>
    %23 = vector.shape_cast %22 : vector<12x2x8x32xf32> to vector<24x8x32xf32>
    %c0_9 = arith.constant 0 : index
    %c0_10 = arith.constant 0 : index
    %c0_11 = arith.constant 0 : index
    %24 = vector.load %arg2[%c0_9, %c0_10, %c0_11] : memref<24x8x32xf32, #tpu.memory_space<vmem>>, vector<24x8x32xf32>
    "tpu.trace_start"() <{level = 10 : i32, message = "nsd,ned->nse"}> : () -> ()
    %cst_12 = arith.constant dense<0.000000e+00> : vector<24x8x8xf32>
    %25 = tpu.matmul %23, %24, %cst_12 {dimension_numbers = #tpu.dot_dimension_numbers<[2], [2], [1], [1], [0, 0, 0, 1, 1, 1], [0], [0]>} : vector<24x8x32xf32>, vector<24x8x32xf32>, vector<24x8x8xf32> -> vector<24x8x8xf32>
    "tpu.trace_stop"() : () -> ()
    %c0_13 = arith.constant 0 : index
    %c0_14 = arith.constant 0 : index
    %c0_15 = arith.constant 0 : index
    %26 = vector.load %arg3[%c0_13, %c0_14, %c0_15] : memref<24x1x8xf32, #tpu.memory_space<vmem>>, vector<24x1x8xf32>
    %27 = vector.broadcast %26 : vector<24x1x8xf32> to vector<24x8x8xf32>
    %28 = arith.addf %25, %27 : vector<24x8x8xf32>
    %29 = vector.extract_strided_slice %28 {offsets = [0, 0, 0], sizes = [8, 8, 8], strides = [1, 1, 1]} : vector<24x8x8xf32> to vector<8x8x8xf32>
    %30 = vector.extract_strided_slice %28 {offsets = [8, 0, 0], sizes = [8, 8, 8], strides = [1, 1, 1]} : vector<24x8x8xf32> to vector<8x8x8xf32>
    %31 = vector.extract_strided_slice %28 {offsets = [16, 0, 0], sizes = [8, 8, 8], strides = [1, 1, 1]} : vector<24x8x8xf32> to vector<8x8x8xf32>
    %cst_16 = arith.constant 8.000000e+00 : f32
    %32 = math.sqrt %cst_16 : f32
    %cst_17 = arith.constant 1.000000e+00 : f32
    %33 = arith.divf %cst_17, %32 : f32
    "tpu.trace_start"() <{level = 10 : i32, message = "nqd,nkd->nqk"}> : () -> ()
    %cst_18 = arith.constant dense<0.000000e+00> : vector<8x8x8xf32>
    %34 = tpu.matmul %29, %30, %cst_18 {dimension_numbers = #tpu.dot_dimension_numbers<[2], [2], [1], [1], [0, 0, 0, 1, 1, 1], [0], [0]>} : vector<8x8x8xf32>, vector<8x8x8xf32>, vector<8x8x8xf32> -> vector<8x8x8xf32>
    "tpu.trace_stop"() : () -> ()
    %35 = vector.broadcast %33 : f32 to vector<8x8x8xf32>
    %36 = arith.mulf %34, %35 : vector<8x8x8xf32>
    %37 = vector.broadcast %19 : vector<8x1x8xf32> to vector<8x8x8xf32>
    %38 = arith.addf %36, %37 : vector<8x8x8xf32>
    %cst_19 = arith.constant dense<0xFF800000> : vector<8x8xf32>
    %39 = vector.multi_reduction <maximumf>, %38, %cst_19 [2] : vector<8x8x8xf32> to vector<8x8xf32>
    %40 = vector.shape_cast %39 : vector<8x8xf32> to vector<8x8x1xf32>
    %41 = vector.broadcast %40 : vector<8x8x1xf32> to vector<8x8x8xf32>
    %42 = arith.subf %38, %41 : vector<8x8x8xf32>
    %43 = math.exp %42 : vector<8x8x8xf32>
    %cst_20 = arith.constant dense<0.000000e+00> : vector<8x8xf32>
    %44 = vector.multi_reduction <add>, %43, %cst_20 [2] : vector<8x8x8xf32> to vector<8x8xf32>
    %45 = vector.shape_cast %44 : vector<8x8xf32> to vector<8x8x1xf32>
    %46 = tpu.reciprocal %45 {approx = true} : vector<8x8x1xf32> -> vector<8x8x1xf32>
    %47 = vector.broadcast %46 : vector<8x8x1xf32> to vector<8x8x8xf32>
    %48 = arith.mulf %43, %47 : vector<8x8x8xf32>
    "tpu.trace_start"() <{level = 10 : i32, message = "nqk,nkd->nqd"}> : () -> ()
    %cst_21 = arith.constant dense<0.000000e+00> : vector<8x8x8xf32>
    %49 = tpu.matmul %48, %31, %cst_21 {dimension_numbers = #tpu.dot_dimension_numbers<[2], [1], [1], [2], [0, 0, 0, 1, 1, 2], [0], [0]>} : vector<8x8x8xf32>, vector<8x8x8xf32>, vector<8x8x8xf32> -> vector<8x8x8xf32>
    "tpu.trace_stop"() : () -> ()
    %c0_22 = arith.constant 0 : index
    %c0_23 = arith.constant 0 : index
    %c0_24 = arith.constant 0 : index
    %50 = vector.load %arg4[%c0_22, %c0_23, %c0_24] : memref<8x32x8xf32, #tpu.memory_space<vmem>>, vector<8x32x8xf32>
    "tpu.trace_start"() <{level = 10 : i32, message = "nsk,ndk->nsd"}> : () -> ()
    %cst_25 = arith.constant dense<0.000000e+00> : vector<8x8x32xf32>
    %51 = tpu.matmul %49, %50, %cst_25 {dimension_numbers = #tpu.dot_dimension_numbers<[2], [2], [1], [1], [0, 0, 0, 1, 1, 1], [0], [0]>} : vector<8x8x8xf32>, vector<8x32x8xf32>, vector<8x8x32xf32> -> vector<8x8x32xf32>
    "tpu.trace_stop"() : () -> ()
    %52 = vector.extract_strided_slice %51 {offsets = [0, 0, 0], sizes = [2, 8, 32], strides = [1, 1, 1]} : vector<8x8x32xf32> to vector<2x8x32xf32>
    %53 = vector.extract_strided_slice %51 {offsets = [2, 0, 0], sizes = [2, 8, 32], strides = [1, 1, 1]} : vector<8x8x32xf32> to vector<2x8x32xf32>
    %54 = arith.addf %52, %53 : vector<2x8x32xf32>
    %55 = vector.extract_strided_slice %51 {offsets = [4, 0, 0], sizes = [2, 8, 32], strides = [1, 1, 1]} : vector<8x8x32xf32> to vector<2x8x32xf32>
    %56 = arith.addf %54, %55 : vector<2x8x32xf32>
    %57 = vector.extract_strided_slice %51 {offsets = [6, 0, 0], sizes = [2, 8, 32], strides = [1, 1, 1]} : vector<8x8x32xf32> to vector<2x8x32xf32>
    %58 = arith.addf %56, %57 : vector<2x8x32xf32>
    %59 = vector.shape_cast %58 : vector<2x8x32xf32> to vector<16x32xf32>
    %60 = vector.broadcast %3 : vector<1x32xf32> to vector<16x32xf32>
    %61 = arith.addf %59, %60 : vector<16x32xf32>
    %62 = arith.addf %61, %1 : vector<16x32xf32>
    %cst_26 = arith.constant dense<0.000000e+00> : vector<16xf32>
    %63 = vector.multi_reduction <add>, %62, %cst_26 [1] : vector<16x32xf32> to vector<16xf32>
    %64 = vector.shape_cast %63 : vector<16xf32> to vector<16x1xf32>
    %cst_27 = arith.constant 3.200000e+01 : f32
    %65 = vector.broadcast %cst_27 : f32 to vector<16x1xf32>
    %66 = arith.divf %64, %65 : vector<16x1xf32>
    %67 = vector.broadcast %66 : vector<16x1xf32> to vector<16x32xf32>
    %68 = arith.subf %62, %67 : vector<16x32xf32>
    %69 = arith.mulf %68, %68 : vector<16x32xf32>
    %cst_28 = arith.constant dense<0.000000e+00> : vector<16xf32>
    %70 = vector.multi_reduction <add>, %69, %cst_28 [1] : vector<16x32xf32> to vector<16xf32>
    %71 = vector.shape_cast %70 : vector<16xf32> to vector<16x1xf32>
    %cst_29 = arith.constant 3.200000e+01 : f32
    %72 = vector.broadcast %cst_29 : f32 to vector<16x1xf32>
    %73 = arith.divf %71, %72 : vector<16x1xf32>
    %74 = vector.broadcast %66 : vector<16x1xf32> to vector<16x32xf32>
    %75 = arith.subf %62, %74 : vector<16x32xf32>
    %cst_30 = arith.constant 9.99999974E-6 : f32
    %76 = vector.broadcast %cst_30 : f32 to vector<16x1xf32>
    %77 = arith.addf %73, %76 : vector<16x1xf32>
    %78 = math.rsqrt %77 : vector<16x1xf32>
    %79 = vector.broadcast %78 : vector<16x1xf32> to vector<16x32xf32>
    %80 = arith.mulf %75, %79 : vector<16x32xf32>
    %81 = vector.broadcast %6 : vector<1x32xf32> to vector<16x32xf32>
    %82 = arith.mulf %80, %81 : vector<16x32xf32>
    %83 = vector.broadcast %7 : vector<1x32xf32> to vector<16x32xf32>
    %84 = arith.addf %82, %83 : vector<16x32xf32>
    %c0_31 = arith.constant 0 : index
    %c0_32 = arith.constant 0 : index
    %85 = vector.load %arg5[%c0_31, %c0_32] : memref<32x64xf32, #tpu.memory_space<vmem>>, vector<32x64xf32>
    %cst_33 = arith.constant dense<0.000000e+00> : vector<16x64xf32>
    %86 = tpu.matmul %84, %85, %cst_33 {dimension_numbers = #tpu.dot_dimension_numbers<[1], [0], [0], [1], [0, 0, 1, 1], [], []>} : vector<16x32xf32>, vector<32x64xf32>, vector<16x64xf32> -> vector<16x64xf32>
    %87 = vector.broadcast %5 : vector<1x64xf32> to vector<16x64xf32>
    %88 = arith.addf %86, %87 : vector<16x64xf32>
    %cst_34 = arith.constant 0.000000e+00 : f32
    %89 = vector.broadcast %cst_34 : f32 to vector<16x64xf32>
    %90 = arith.maximumf %88, %89 : vector<16x64xf32>
    %c0_35 = arith.constant 0 : index
    %c0_36 = arith.constant 0 : index
    %91 = vector.load %arg6[%c0_35, %c0_36] : memref<64x32xf32, #tpu.memory_space<vmem>>, vector<64x32xf32>
    %cst_37 = arith.constant dense<0.000000e+00> : vector<16x32xf32>
    %92 = tpu.matmul %90, %91, %cst_37 {dimension_numbers = #tpu.dot_dimension_numbers<[1], [0], [0], [1], [0, 0, 1, 1], [], []>} : vector<16x64xf32>, vector<64x32xf32>, vector<16x32xf32> -> vector<16x32xf32>
    %93 = vector.broadcast %4 : vector<1x32xf32> to vector<16x32xf32>
    %94 = arith.addf %92, %93 : vector<16x32xf32>
    %95 = arith.addf %94, %84 : vector<16x32xf32>
    %cst_38 = arith.constant dense<0.000000e+00> : vector<16xf32>
    %96 = vector.multi_reduction <add>, %95, %cst_38 [1] : vector<16x32xf32> to vector<16xf32>
    %97 = vector.shape_cast %96 : vector<16xf32> to vector<16x1xf32>
    %cst_39 = arith.constant 3.200000e+01 : f32
    %98 = vector.broadcast %cst_39 : f32 to vector<16x1xf32>
    %99 = arith.divf %97, %98 : vector<16x1xf32>
    %100 = vector.broadcast %99 : vector<16x1xf32> to vector<16x32xf32>
    %101 = arith.subf %95, %100 : vector<16x32xf32>
    %102 = arith.mulf %101, %101 : vector<16x32xf32>
    %cst_40 = arith.constant dense<0.000000e+00> : vector<16xf32>
    %103 = vector.multi_reduction <add>, %102, %cst_40 [1] : vector<16x32xf32> to vector<16xf32>
    %104 = vector.shape_cast %103 : vector<16xf32> to vector<16x1xf32>
    %cst_41 = arith.constant 3.200000e+01 : f32
    %105 = vector.broadcast %cst_41 : f32 to vector<16x1xf32>
    %106 = arith.divf %104, %105 : vector<16x1xf32>
    %107 = vector.broadcast %99 : vector<16x1xf32> to vector<16x32xf32>
    %108 = arith.subf %95, %107 : vector<16x32xf32>
    %cst_42 = arith.constant 9.99999974E-6 : f32
    %109 = vector.broadcast %cst_42 : f32 to vector<16x1xf32>
    %110 = arith.addf %106, %109 : vector<16x1xf32>
    %111 = math.rsqrt %110 : vector<16x1xf32>
    %112 = vector.broadcast %111 : vector<16x1xf32> to vector<16x32xf32>
    %113 = arith.mulf %108, %112 : vector<16x32xf32>
    %114 = vector.broadcast %8 : vector<1x32xf32> to vector<16x32xf32>
    %115 = arith.mulf %113, %114 : vector<16x32xf32>
    %116 = vector.broadcast %9 : vector<1x32xf32> to vector<16x32xf32>
    %117 = arith.addf %115, %116 : vector<16x32xf32>
    %c0_43 = arith.constant 0 : index
    %c0_44 = arith.constant 0 : index
    %118 = vector.load %arg8[%c0_43, %c0_44] : memref<16x32xf32, #tpu.memory_space<vmem>>, vector<16x32xf32>
    tpu.vector_store %arg8[%c0_43, %c0_44], %117 {strides = array<i32>} : memref<16x32xf32, #tpu.memory_space<vmem>>, vector<16x32xf32>,
    return
  }
}

</mosaic_0001>

<bundles_post_ra>
// kernel: tpu_custom_call.1
= control target key start
LH: loop header
LB: loop body
LE: loop exit
PB: predicated region body
PF: predicated region fallthrough
CT: control target
= control target key end

     0   :  { %vm231_vm0 = vcmask 261120   ;;  %v4972_v2 = vmov 0.0   ;;  %vm4973_vm1 = vmmov 0   ;;  %s5725_s0 = inlined_call_operand.vmem [shape: f32[2,8,32], index: 0, kind: input, shape index: {}]   ;;  %s5726_s1 = inlined_call_operand.vmem [shape: f32[2,1,8], index: 1, kind: input, shape index: {}]   ;;  %s5727_s2 = inlined_call_operand.vmem [shape: f32[24,8,32], index: 2, kind: input, shape index: {}]   ;;  %s5728_s3 = inlined_call_operand.vmem [shape: f32[24,1,8], index: 3, kind: input, shape index: {}]   ;;  %s5729_s4 = inlined_call_operand.vmem [shape: f32[8,32,8], index: 4, kind: input, shape index: {}]   ;;  %s5730_s5 = inlined_call_operand.vmem [shape: f32[32,64], index: 5, kind: input, shape index: {}]   ;;  %s5731_s6 = inlined_call_operand.vmem [shape: f32[64,32], index: 6, kind: input, shape index: {}]   ;;  %s5732_s7 = inlined_call_operand.vmem [shape: f32[8,128], index: 7, kind: input, shape index: {}]   ;;  %s5733_s8 = inlined_call_operand.hbm [shape: f32[16,32], index: 8, kind: output, shape index: {}]  }
   0x1   :  { %v39_v0 = vld [vmem:[%s5727_s2] sm:$0xff]  ;;  %v42_v1 = vld [vmem:[%s5727_s2 + $0x18] sm:$0xff]  ;;  %4582 = vmatprep.subr.mxu0 %v4972_v2  ;;  %4597 = vmatprep.subr.mxu1 %v4972_v2  ;;  %v5043_v4 = vld [vmem:[%s5725_s0 + $0x8] sm:$0xff] }
   0x2   :  { %4583 = vmatpush3.xpose.msk.msra.mxu0 %vm231_vm0, %v39_v0  ;;  %4598 = vmatpush3.xpose.msk.msra.mxu1 %vm231_vm0, %v42_v1  ;;  %v5038_v3 = vld [vmem:[%s5725_s0] sm:$0xff]  ;;  %v40_v5 = vld [vmem:[%s5727_s2 + $0x8] sm:$0xff] }
   0x3   :  { %4584 = vmatprep.mubr.msk.f32.mxu0 %vm4973_vm1, %v4972_v2  ;;  %4599 = vmatprep.mubr.msk.f32.mxu1 %vm4973_vm1, %v4972_v2  ;;  %v44_v6 = vld [vmem:[%s5727_s2 + $0x28] sm:$0xff] }
   0x4   :  { %4587 = vmatprep.subr.mxu0 %v4972_v2  ;;  %4607 = vmatprep.subr.mxu1 %v4972_v2 }
   0x5   :  { %4585 = vmatmul.mubr.msk.f32.vlgmr.msra.gmra.mxu0 %vm231_vm0, %v5038_v3  ;;  %4600 = vmatmul.mubr.msk.f32.vlgmr.msra.gmra.mxu1 %vm231_vm0, %v5043_v4 }
   0x6   :  { %4588 = vmatpush3.xpose.msk.msra.mxu0 %vm231_vm0, %v40_v5  ;;  %4608 = vmatpush3.xpose.msk.msra.mxu1 %vm231_vm0, %v44_v6 }
   0x7   :  { %13 = vsyncpa [#allocation3], 0  ;;  %4589 = vmatprep.mubr.msk.f32.mxu0 %vm4973_vm1, %v4972_v2  ;;  %4609 = vmatprep.mubr.msk.f32.mxu1 %vm4973_vm1, %v4972_v2  ;;  %v41_v7 = vld [vmem:[%s5727_s2 + $0x10] sm:$0xff]  ;;  %v46_v8 = vld [vmem:[%s5727_s2 + $0x38] sm:$0xff]  ;;  %vm1990_vm2 = vcmask 64512   ;;  %s4975_s20 = smov 64  }
   0x8   :  { %4592 = vmatprep.subr.mxu0 %v4972_v2  ;;  %4617 = vmatprep.subr.mxu1 %v4972_v2  ;;  %v43_v9 = vld [vmem:[%s5727_s2 + $0x20] sm:$0xff]  ;;  %v48_v10 = vld [vmem:[%s5727_s2 + $0x48] sm:$0xff]  ;;  %v45_v11 = vld [vmem:[%s5727_s2 + $0x30] sm:$0xff]  ;;  %s4976_s30 = smov 96   ;;  %vm4166_vm5 = vcmask 523264  }
   0x9   :  { %4590 = vmatmul.mubr.msk.f32.vlgmr.msra.gmra.mxu0 %vm231_vm0, %v5043_v4  ;;  %4610 = vmatmul.mubr.msk.f32.vlgmr.msra.gmra.mxu1 %vm231_vm0, %v5043_v4  ;;  %v50_v12 = vld [vmem:[%s5727_s2 + $0x58] sm:$0xff]  ;;  %v47_v13 = vld [vmem:[%s5727_s2 + $0x40] sm:$0xff]  ;;  %v52_v14 = vld [vmem:[%s5727_s2 + $0x68] sm:$0xff] }
   0xa   :  { %4593 = vmatpush3.xpose.msk.msra.mxu0 %vm231_vm0, %v41_v7  ;;  %4618 = vmatpush3.xpose.msk.msra.mxu1 %vm231_vm0, %v46_v8  ;;  %v49_v15 = vld [vmem:[%s5727_s2 + $0x50] sm:$0xff]  ;;  %v54_v16 = vld [vmem:[%s5727_s2 + $0x78] sm:$0xff]  ;;  %v51_v17 = vld [vmem:[%s5727_s2 + $0x60] sm:$0xff] }
   0xb   :  { %4594 = vmatprep.mubr.msk.f32.mxu0 %vm4973_vm1, %v4972_v2  ;;  %4619 = vmatprep.mubr.msk.f32.mxu1 %vm4973_vm1, %v4972_v2  ;;  %v56_v18 = vld [vmem:[%s5727_s2 + $0x88] sm:$0xff]  ;;  %v53_v19 = vld [vmem:[%s5727_s2 + $0x70] sm:$0xff]  ;;  %v58_v20 = vld [vmem:[%s5727_s2 + $0x98] sm:$0xff] }
   0xc   :  { %4602 = vmatprep.subr.mxu0 %v4972_v2  ;;  %4627 = vmatprep.subr.mxu1 %v4972_v2  ;;  %v55_v21 = vld [vmem:[%s5727_s2 + $0x80] sm:$0xff]  ;;  %v60_v22 = vld [vmem:[%s5727_s2 + $0xa8] sm:$0xff]  ;;  %v57_v23 = vld [vmem:[%s5727_s2 + $0x90] sm:$0xff] }
   0xd   :  { %4595 = vmatmul.mubr.msk.f32.vlgmr.msra.gmra.mxu0 %vm231_vm0, %v5038_v3  ;;  %4620 = vmatmul.mubr.msk.f32.vlgmr.msra.gmra.mxu1 %vm231_vm0, %v5043_v4  ;;  %v62_v24 = vld [vmem:[%s5727_s2 + $0xb8] sm:$0xff]  ;;  %v59_v25 = vld [vmem:[%s5727_s2 + $0xa0] sm:$0xff]  ;;  %v61_v26 = vld [vmem:[%s5727_s2 + $0xb0] sm:$0xff] }
   0xe   :  { %4603 = vmatpush3.xpose.msk.msra.mxu0 %vm231_vm0, %v43_v9  ;;  %4628 = vmatpush3.xpose.msk.msra.mxu1 %vm231_vm0, %v48_v10  ;;  %v4315_v39 = vld [vmem:[%s5728_s3 + $0x9] ss:$0 sm:$0xff]  ;;  %v4307_v42 = vld [vmem:[%s5728_s3 + $0x1] ss:$0 sm:$0xff]  ;;  %v4317_v46 = vld [vmem:[%s5728_s3 + $0xb] ss:$0 sm:$0xff] }
   0xf   :  { %4604 = vmatprep.mubr.msk.f32.mxu0 %vm4973_vm1, %v4972_v2  ;;  %4629 = vmatprep.mubr.msk.f32.mxu1 %vm4973_vm1, %v4972_v2  ;;  %v4309_v50 = vld [vmem:[%s5728_s3 + $0x3] ss:$0 sm:$0xff]  ;;  %v4314_v54 = vld [vmem:[%s5728_s3 + $0x8] ss:$0 sm:$0xff]  ;;  %v4319_v55 = vld [vmem:[%s5728_s3 + $0xd] ss:$0 sm:$0xff] }
  0x10   :  { %4612 = vmatprep.subr.mxu0 %v4972_v2  ;;  %4637 = vmatprep.subr.mxu1 %v4972_v2  ;;  %v4306_v59 = vld [vmem:[%s5728_s3] ss:$0 sm:$0xff]  ;;  %v4311_v60 = vld [vmem:[%s5728_s3 + $0x5] ss:$0 sm:$0xff]  ;;  %v4316_v1 = vld [vmem:[%s5728_s3 + $0xa] ss:$0 sm:$0xff] }
  0x11   :  { %4605 = vmatmul.mubr.msk.f32.vlgmr.msra.gmra.mxu0 %vm231_vm0, %v5038_v3  ;;  %4630 = vmatmul.mubr.msk.f32.vlgmr.msra.gmra.mxu1 %vm231_vm0, %v5043_v4  ;;  %v4308_v8 = vld [vmem:[%s5728_s3 + $0x2] ss:$0 sm:$0xff]  ;;  %v4313_v9 = vld [vmem:[%s5728_s3 + $0x7] ss:$0 sm:$0xff] }
  0x12   :  { %4613 = vmatpush3.xpose.msk.msra.mxu0 %vm231_vm0, %v45_v11  ;;  %4638 = vmatpush3.xpose.msk.msra.mxu1 %vm231_vm0, %v50_v12 }
  0x13   :  { %4614 = vmatprep.mubr.msk.f32.mxu0 %vm4973_vm1, %v4972_v2  ;;  %4639 = vmatprep.mubr.msk.f32.mxu1 %vm4973_vm1, %v4972_v2 }
  0x14   :  { %4622 = vmatprep.subr.mxu0 %v4972_v2  ;;  %4647 = vmatprep.subr.mxu1 %v4972_v2 }
  0x15   :  { %4615 = vmatmul.mubr.msk.f32.vlgmr.msra.gmra.mxu0 %vm231_vm0, %v5038_v3  ;;  %4640 = vmatmul.mubr.msk.f32.vlgmr.msra.gmra.mxu1 %vm231_vm0, %v5043_v4 }
  0x16   :  { %4623 = vmatpush3.xpose.msk.msra.mxu0 %vm231_vm0, %v47_v13  ;;  %4648 = vmatpush3.xpose.msk.msra.mxu1 %vm231_vm0, %v52_v14  ;;  %v4318_v13 = vld [vmem:[%s5728_s3 + $0xc] ss:$0 sm:$0xff] }
  0x17   :  { %4624 = vmatprep.mubr.msk.f32.mxu0 %vm4973_vm1, %v4972_v2  ;;  %4649 = vmatprep.mubr.msk.f32.mxu1 %vm4973_vm1, %v4972_v2 }
  0x18   :  { %4632 = vmatprep.subr.mxu0 %v4972_v2  ;;  %4657 = vmatprep.subr.mxu1 %v4972_v2 }
  0x19   :  { %4625 = vmatmul.mubr.msk.f32.vlgmr.msra.gmra.mxu0 %vm231_vm0, %v5038_v3  ;;  %4650 = vmatmul.mubr.msk.f32.vlgmr.msra.gmra.mxu1 %vm231_vm0, %v5043_v4 }
  0x1a   :  { %4633 = vmatpush3.xpose.msk.msra.mxu0 %vm231_vm0, %v49_v15  ;;  %4658 = vmatpush3.xpose.msk.msra.mxu1 %vm231_vm0, %v54_v16 }
  0x1b   :  { %4634 = vmatprep.mubr.msk.f32.mxu0 %vm4973_vm1, %v4972_v2  ;;  %4659 = vmatprep.mubr.msk.f32.mxu1 %vm4973_vm1, %v4972_v2 }
  0x1c   :  { %4642 = vmatprep.subr.mxu0 %v4972_v2  ;;  %4667 = vmatprep.subr.mxu1 %v4972_v2 }
  0x1d   :  { %4635 = vmatmul.mubr.msk.f32.vlgmr.msra.gmra.mxu0 %vm231_vm0, %v5038_v3  ;;  %4660 = vmatmul.mubr.msk.f32.vlgmr.msra.gmra.mxu1 %vm231_vm0, %v5043_v4 }
  0x1e   :  { %4643 = vmatpush3.xpose.msk.msra.mxu0 %vm231_vm0, %v51_v17  ;;  %4644 = vmatprep.mubr.msk.f32.mxu0 %vm4973_vm1, %v4972_v2 }
  0x1f   :  { %4652 = vmatprep.subr.mxu0 %v4972_v2  ;;  %4668 = vmatpush3.xpose.msk.msra.mxu1 %vm231_vm0, %v56_v18  ;;  %v4323_v18 = vld [vmem:[%s5728_s3 + $0x11] ss:$0 sm:$0xff] }
  0x20   :  { %4669 = vmatprep.mubr.msk.f32.mxu1 %vm4973_vm1, %v4972_v2  ;;  %4677 = vmatprep.subr.mxu1 %v4972_v2 }
  0x21   :  { %4645 = vmatmul.mubr.msk.f32.vlgmr.msra.gmra.mxu0 %vm231_vm0, %v5038_v3 }
  0x22   :  { %4653 = vmatpush3.xpose.msk.msra.mxu0 %vm231_vm0, %v53_v19  ;;  %4654 = vmatprep.mubr.msk.f32.mxu0 %vm4973_vm1, %v4972_v2  ;;  %v4310_v19 = vld [vmem:[%s5728_s3 + $0x4] ss:$0 sm:$0xff] }
  0x23   :  { %4670 = vmatmul.mubr.msk.f32.vlgmr.msra.gmra.mxu1 %vm231_vm0, %v5043_v4  ;;  %4662 = vmatprep.subr.mxu0 %v4972_v2 }
  0x24   :  { %4679 = vmatprep.mubr.msk.f32.mxu1 %vm4973_vm1, %v4972_v2  ;;  %4678 = vmatpush3.xpose.msk.msra.mxu1 %vm231_vm0, %v58_v20 }
  0x25   :  { %4655 = vmatmul.mubr.msk.f32.vlgmr.msra.gmra.mxu0 %vm231_vm0, %v5038_v3  ;;  %4687 = vmatprep.subr.mxu1 %v4972_v2 }
  0x26   :  { %4664 = vmatprep.mubr.msk.f32.mxu0 %vm4973_vm1, %v4972_v2  ;;  %4663 = vmatpush3.xpose.msk.msra.mxu0 %vm231_vm0, %v55_v21 }
  0x27   :  { %4680 = vmatmul.mubr.msk.f32.vlgmr.msra.gmra.mxu1 %vm231_vm0, %v5043_v4  ;;  %4672 = vmatprep.subr.mxu0 %v4972_v2 }
  0x28   :  { %4688 = vmatpush3.xpose.msk.msra.mxu1 %vm231_vm0, %v60_v22  ;;  %4689 = vmatprep.mubr.msk.f32.mxu1 %vm4973_vm1, %v4972_v2  ;;  %v4320_v22 = vld [vmem:[%s5728_s3 + $0xe] ss:$0 sm:$0xff] }
  0x29   :  { %4665 = vmatmul.mubr.msk.f32.vlgmr.msra.gmra.mxu0 %vm231_vm0, %v5038_v3  ;;  %4697 = vmatprep.subr.mxu1 %v4972_v2 }
  0x2a   :  { %4673 = vmatpush3.xpose.msk.msra.mxu0 %vm231_vm0, %v57_v23  ;;  %4674 = vmatprep.mubr.msk.f32.mxu0 %vm4973_vm1, %v4972_v2 }
  0x2b   :  { %4690 = vmatmul.mubr.msk.f32.vlgmr.msra.gmra.mxu1 %vm231_vm0, %v5043_v4  ;;  %4682 = vmatprep.subr.mxu0 %v4972_v2 }
  0x2c   :  { %4698 = vmatpush3.xpose.msk.msra.mxu1 %vm231_vm0, %v62_v24  ;;  %4699 = vmatprep.mubr.msk.f32.mxu1 %vm4973_vm1, %v4972_v2 }
  0x2d   :  { %4675 = vmatmul.mubr.msk.f32.vlgmr.msra.gmra.mxu0 %vm231_vm0, %v5038_v3  ;;  %4707 = vmatprep.subr.mxu1 %v4972_v2 }
  0x2e   :  { %4683 = vmatpush3.xpose.msk.msra.mxu0 %vm231_vm0, %v59_v25  ;;  %4684 = vmatprep.mubr.msk.f32.mxu0 %vm4973_vm1, %v4972_v2 }
  0x2f   :  { %4700 = vmatmul.mubr.msk.f32.vlgmr.msra.gmra.mxu1 %vm231_vm0, %v5043_v4  ;;  %4692 = vmatprep.subr.mxu0 %v4972_v2 }
  0x30   :  { %4709 = vmatprep.mubr.msk.f32.mxu1 %vm4973_vm1, %v4972_v2 }
  0x31   :  { %4685 = vmatmul.mubr.msk.f32.vlgmr.msra.gmra.mxu0 %vm231_vm0, %v5038_v3 }
  0x32   :  { %4693 = vmatpush3.xpose.msk.msra.mxu0 %vm231_vm0, %v61_v26  ;;  %4694 = vmatprep.mubr.msk.f32.mxu0 %vm4973_vm1, %v4972_v2 }
  0x33   :  { %4702 = vmatprep.subr.mxu0 %v4972_v2 }
  0x35   :  { %4695 = vmatmul.mubr.msk.f32.vlgmr.msra.gmra.mxu0 %vm231_vm0, %v5038_v3  ;;  %v4321_v3 = vld [vmem:[%s5728_s3 + $0xf] ss:$0 sm:$0xff] }
  0x36   :  { %4704 = vmatprep.mubr.msk.f32.mxu0 %vm4973_vm1, %v4972_v2 }
  0xc5   :  { %v304_v27 = vpop.f32.mrf.mxu0  ;;  %v526_v28 = vpop.f32.mrf.mxu1 }
  0xc6   :  { %v527_v56 = vadd.f32 %v4309_v50, %v526_v28  ;;  %v305_v4 = vadd.f32 %v4306_v59, %v304_v27  ;;  %v4312_v28 = vld [vmem:[%s5728_s3 + $0x6] ss:$0 sm:$0xff] }
  0xc7   :  { %v4586_v29 = vpop.f32.mrf.mxu0  ;;  %v4601_v30 = vpop.f32.mrf.mxu1 }
  0xc9   :  { %v380_v31 = vpop.f32.mrf.mxu0  ;;  %v672_v32 = vpop.f32.mrf.mxu1 }
  0xca   :  { %v381_v47 = vadd.f32 %v4307_v42, %v380_v31  ;;  %v673_v5 = vadd.f32 %v4311_v60, %v672_v32 }
  0xcb   :  { %v4591_v33 = vpop.f32.mrf.mxu0  ;;  %v4611_v34 = vpop.f32.mrf.mxu1 }
  0xcc   :  { %v4322_v33 = vld [vmem:[%s5728_s3 + $0x10] ss:$0 sm:$0xff] }
  0xcd   :  { %v453_v35 = vpop.f32.mrf.mxu0  ;;  %v818_v36 = vpop.f32.mrf.mxu1 }
  0xce   :  { %v454_v15 = vadd.f32 %v4308_v8, %v453_v35  ;;  %v819_v16 = vadd.f32 %v4313_v9, %v818_v36 }
  0xcf   :  { %v4596_v37 = vpop.f32.mrf.mxu0  ;;  %v4621_v38 = vpop.f32.mrf.mxu1 }
  0xd1   :  { %v5260_v40 = vpop.f32.mrf.mxu0  ;;  %v964_v41 = vpop.f32.mrf.mxu1 }
  0xd2   :  { %v965_v43 = vadd.f32 %v4315_v39, %v964_v41  ;;  %v600_v25 = vadd.f32 %v4310_v19, %v5260_v40 }
  0xd3   :  { %v4606_v44 = vpop.f32.mrf.mxu0  ;;  %v4631_v45 = vpop.f32.mrf.mxu1 }
  0xd4   :  { %4708 = vmatpush3.xpose.msk.msra.mxu1 %vm1990_vm2, %v965_v43 }
  0xd5   :  { %v5269_v48 = vpop.f32.mrf.mxu0  ;;  %v1110_v49 = vpop.f32.mrf.mxu1  ;;  %4717 = vmatprep.subr.mxu1 %v4972_v2 }
  0xd6   :  { %v1111_v51 = vadd.f32 %v4317_v46, %v1110_v49  ;;  %v746_v31 = vadd.f32 %v4312_v28, %v5269_v48  ;;  %v2609_v48 = vlaneseq  ;;  %v33_v49 = vld [vmem:[%s5726_s1] sm:$0x1] }
  0xd7   :  { %v4616_v52 = vpop.f32.mrf.mxu0  ;;  %v4641_v53 = vpop.f32.mrf.mxu1  ;;  %4710 = vmatmul.mubr.msk.f32.vlgmr.msra.gmra.mxu1 %vm1990_vm2, %v381_v47  ;;  %vm35_vm3 = vcmp.gt.f32.partialorder %v33_v49, 0.0 }
  0xd8   :  { %4718 = vmatpush3.xpose.msk.msra.mxu1 %vm1990_vm2, %v1111_v51  ;;  %4719 = vmatprep.mubr.msk.f32.mxu1 %vm4973_vm1, %v4972_v2  ;;  %v34_v51 = vld [vmem:[%s5726_s1 + $0x1] sm:$0x1]  ;;  %v5377_v52 = vshrl.u32 %v2609_v48, 7 }
  0xd9   :  { %v891_v57 = vpop.f32.mrf.mxu0  ;;  %v1256_v58 = vpop.f32.mrf.mxu1  ;;  %4727 = vmatprep.subr.mxu1 %v4972_v2  ;;  %vm36_vm4 = vcmp.gt.f32.partialorder %v34_v51, 0.0 }
  0xda   :  { %v892_v61 = vadd.f32 %v4314_v54, %v891_v57  ;;  %v1257_v62 = vadd.f32 %v4319_v55, %v1256_v58  ;;  %v4974_v55 = vmov -1e+09   ;;  %v5380_v57 = vsub.s32 0, %v5377_v52 }
  0xdb   :  { %v4626_v63 = vpop.f32.mrf.mxu0  ;;  %v4651_v0 = vpop.f32.mrf.mxu1  ;;  %4720 = vmatmul.mubr.msk.f32.vlgmr.msra.gmra.mxu1 %vm1990_vm2, %v527_v56  ;;  %v37_v56 = vsel %vm35_vm3, 0.0, %v4974_v55  ;;  %v38_v59 = vsel %vm36_vm4, 0.0, %v4974_v55 }
  0xdc   :  { %4703 = vmatpush3.xpose.msk.msra.mxu0 %vm1990_vm2, %v892_v61  ;;  %4728 = vmatpush3.xpose.msk.msra.mxu1 %vm1990_vm2, %v1257_v62  ;;  %v2612_v60 = vrot.slane %v37_v56, %v5380_v57 }
  0xdd   :  { %v1037_v6 = vpop.f32.mrf.mxu0  ;;  %v1402_v7 = vpop.f32.mrf.mxu1  ;;  %4729 = vmatprep.mubr.msk.f32.mxu1 %vm4973_vm1, %v4972_v2  ;;  %4712 = vmatprep.subr.mxu0 %v4972_v2 }
  0xde   :  { %v1038_v10 = vadd.f32 %v4316_v1, %v1037_v6  ;;  %v1403_v11 = vadd.f32 %v4321_v3, %v1402_v7  ;;  %4737 = vmatprep.subr.mxu1 %v4972_v2  ;;  %v2616_v1 = vrot.slane %v38_v59, %v5380_v57 }
  0xdf   :  { %v4636_v12 = vpop.f32.mrf.mxu0  ;;  %4705 = vmatmul.mubr.msk.f32.vlgmr.msra.gmra.mxu0 %vm1990_vm2, %v305_v4  ;;  %4730 = vmatmul.mubr.msk.f32.vlgmr.msra.gmra.mxu1 %vm1990_vm2, %v673_v5  ;;  %v4661_v14 = vpop.f32.mrf.mxu1 }
  0xe0   :  { %4713 = vmatpush3.xpose.msk.msra.mxu0 %vm1990_vm2, %v1038_v10  ;;  %4738 = vmatpush3.xpose.msk.msra.mxu1 %vm1990_vm2, %v1403_v11 }
  0xe1   :  { %v1183_v17 = vpop.f32.mrf.mxu0  ;;  %4714 = vmatprep.mubr.msk.f32.mxu0 %vm4973_vm1, %v4972_v2  ;;  %4739 = vmatprep.mubr.msk.f32.mxu1 %vm4973_vm1, %v4972_v2 }
  0xe2   :  { %v1184_v20 = vadd.f32 %v4318_v13, %v1183_v17  ;;  %4722 = vmatprep.subr.mxu0 %v4972_v2  ;;  %4747 = vmatprep.subr.mxu1 %v4972_v2 }
  0xe3   :  { %v4646_v21 = vpop.f32.mrf.mxu0  ;;  %4715 = vmatmul.mubr.msk.f32.vlgmr.msra.gmra.mxu0 %vm1990_vm2, %v454_v15  ;;  %4740 = vmatmul.mubr.msk.f32.vlgmr.msra.gmra.mxu1 %vm1990_vm2, %v819_v16  ;;  %v1548_v23 = vpop.f32.mrf.mxu1 }
  0xe4   :  { %4723 = vmatpush3.xpose.msk.msra.mxu0 %vm1990_vm2, %v1184_v20  ;;  %4724 = vmatprep.mubr.msk.f32.mxu0 %vm4973_vm1, %v4972_v2  ;;  %v1549_v24 = vadd.f32 %v4323_v18, %v1548_v23 }
  0xe5   :  { %v1329_v26 = vpop.f32.mrf.mxu0  ;;  %4732 = vmatprep.subr.mxu0 %v4972_v2  ;;  %v4671_v27 = vpop.f32.mrf.mxu1  ;;  %4749 = vmatprep.mubr.msk.f32.mxu1 %vm4973_vm1, %v4972_v2 }
  0xe6   :  { %v1330_v29 = vadd.f32 %v4320_v22, %v1329_v26  ;;  %4748 = vmatpush3.msra.mxu1 %v1549_v24 }
  0xe7   :  { %4725 = vmatmul.mubr.msk.f32.vlgmr.msra.gmra.mxu0 %vm1990_vm2, %v600_v25  ;;  %v4656_v30 = vpop.f32.mrf.mxu0  ;;  %4757 = vmatprep.subr.mxu1 %v4972_v2  ;;  %v5355_v32 = vpop.f32.mrf.mxu1 }
  0xe8   :  { %4733 = vmatpush3.xpose.msk.msra.mxu0 %vm1990_vm2, %v1330_v29  ;;  %4734 = vmatprep.mubr.msk.f32.mxu0 %vm4973_vm1, %v4972_v2 }
  0xe9   :  { %4742 = vmatprep.subr.mxu0 %v4972_v2  ;;  %v4681_v34 = vpop.f32.mrf.mxu1  ;;  %v1475_v35 = vpop.f32.mrf.mxu0 }
  0xea   :  { %v1476_v36 = vadd.f32 %v4322_v33, %v1475_v35 }
  0xeb   :  { %4735 = vmatmul.mubr.msk.f32.vlgmr.msra.gmra.mxu0 %vm1990_vm2, %v746_v31  ;;  %v5360_v37 = vpop.f32.mrf.mxu1  ;;  %v4666_v38 = vpop.f32.mrf.mxu0 }
  0xec   :  { %4744 = vmatprep.mubr.msk.f32.mxu0 %vm4973_vm1, %v4972_v2  ;;  %4743 = vmatpush3.msra.mxu0 %v1476_v36 }
  0xed   :  { %v4691_v39 = vpop.f32.mrf.mxu1  ;;  %v5362_v40 = vpop.f32.mrf.mxu0  ;;  %4752 = vmatprep.subr.mxu0 %v4972_v2 }
  0xef   :  { %v5365_v41 = vpop.f32.mrf.mxu1  ;;  %v4676_v42 = vpop.f32.mrf.mxu0 }
  0xf1   :  { %v4701_v43 = vpop.f32.mrf.mxu1  ;;  %v5367_v44 = vpop.f32.mrf.mxu0 }
  0xf3   :  { %v4686_v45 = vpop.f32.mrf.mxu0 }
  0xf5   :  { %v5369_v46 = vpop.f32.mrf.mxu0 }
  0xf7   :  { %v4696_v47 = vpop.f32.mrf.mxu0 }
 0x197   :  { %v2139_v50 = vpop.f32.mrf.mxu1 }
 0x198   :  { %v2600_v63 = vmul.f32 0.35355338, %v2139_v50 }
 0x199   :  { %v4711_v53 = vpop.f32.mrf.mxu1 }
 0x19a   :  { %v2620_v11 = vadd.f32 %v2616_v1, %v2600_v63 }
 0x19b   :  { %v2291_v54 = vpop.f32.mrf.mxu1 }
 0x19c   :  { %v2602_v6 = vmul.f32 0.35355338, %v2291_v54  ;;  %v2630_v19 = vsel %vm1990_vm2, %v2620_v11, -inf }
 0x19d   :  { %v4721_v58 = vpop.f32.mrf.mxu1 }
 0x19e   :  { %v2622_v16 = vadd.f32 %v2616_v1, %v2602_v6 }
 0x19f   :  { %v2063_v61 = vpop.f32.mrf.mxu0  ;;  %v2443_v62 = vpop.f32.mrf.mxu1 }
 0x1a0   :  { %v2599_v0 = vmul.f32 0.35355338, %v2063_v61  ;;  %v2604_v17 = vmul.f32 0.35355338, %v2443_v62  ;;  %v2636_v24 = vsel %vm1990_vm2, %v2622_v16, -inf }
 0x1a1   :  { %v4706_v3 = vpop.f32.mrf.mxu0  ;;  %v4731_v4 = vpop.f32.mrf.mxu1 }
 0x1a2   :  { %v2619_v5 = vadd.f32 %v2612_v60, %v2599_v0  ;;  %v2624_v28 = vadd.f32 %v2616_v1, %v2604_v17 }
 0x1a3   :  { %v2215_v7 = vpop.f32.mrf.mxu0  ;;  %v2595_v8 = vpop.f32.mrf.mxu1 }
 0x1a4   :  { %v2601_v9 = vmul.f32 0.35355338, %v2215_v7  ;;  %v2627_v10 = vsel %vm1990_vm2, %v2619_v5, -inf  ;;  %v2606_v25 = vmul.f32 0.35355338, %v2595_v8  ;;  %v2642_v31 = vsel %vm1990_vm2, %v2624_v28, -inf }
 0x1a5   :  { %v4741_v12 = vpop.f32.mrf.mxu1  ;;  %2628 = vmax.xlane.f32.xlu0 %v2627_v10  ;;  %v4716_v13 = vpop.f32.mrf.mxu0 }
 0x1a6   :  { %v2621_v14 = vadd.f32 %v2612_v60, %v2601_v9  ;;  %v2626_v34 = vadd.f32 %v2616_v1, %v2606_v25 }
 0x1a7   :  { %v2367_v15 = vpop.f32.mrf.mxu0 }
 0x1a8   :  { %v2603_v18 = vmul.f32 0.35355338, %v2367_v15  ;;  %v2633_v20 = vsel %vm1990_vm2, %v2621_v14, -inf  ;;  %v2648_v35 = vsel %vm1990_vm2, %v2626_v34, -inf }
 0x1a9   :  { %2631 = vmax.xlane.f32.xlu0 %v2630_v19  ;;  %2634 = vmax.xlane.f32.xlu1 %v2633_v20  ;;  %v4726_v21 = vpop.f32.mrf.mxu0 }
 0x1aa   :  { %v2623_v22 = vadd.f32 %v2612_v60, %v2603_v18 }
 0x1ab   :  { %v2519_v23 = vpop.f32.mrf.mxu0 }
 0x1ac   :  { %v2605_v26 = vmul.f32 0.35355338, %v2519_v23  ;;  %v2639_v27 = vsel %vm1990_vm2, %v2623_v22, -inf }
 0x1ad   :  { %2637 = vmax.xlane.f32.xlu1 %v2636_v24  ;;  %2640 = vmax.xlane.f32.xlu0 %v2639_v27  ;;  %v4736_v29 = vpop.f32.mrf.mxu0 }
 0x1ae   :  { %v2625_v30 = vadd.f32 %v2612_v60, %v2605_v26  ;;  %v4324_v26 = vld [vmem:[%s5728_s3 + $0x12] ss:$0 sm:$0xff] }
 0x1b0   :  { %v2645_v33 = vsel %vm1990_vm2, %v2625_v30, -inf }
 0x1b1   :  { %2643 = vmax.xlane.f32.xlu1 %v2642_v31  ;;  %2646 = vmax.xlane.f32.xlu0 %v2645_v33  ;;  %v4325_v33 = vld [vmem:[%s5728_s3 + $0x13] ss:$0 sm:$0xff] }
 0x1b5   :  { %2649 = vmax.xlane.f32.xlu1 %v2648_v35  ;;  %v4326_v35 = vld [vmem:[%s5728_s3 + $0x14] ss:$0 sm:$0xff] }
 0x22e   :  { %v2629_v36 = vpop.xlane.xlu0 %2628 }
 0x22f   :  { %v2651_v38 = vsub.f32 %v2619_v5, %v2629_v36 }
 0x231   :  { %v2659_v39 = vmul.f32 1.442695, %v2651_v38  ;;  %v1695_v38 = vadd.f32 %v4325_v33, %v5355_v32  ;;  %v3315_v33 = vld [vmem:[%s5729_s4 + $0x80] sm:$0xff] }
 0x232   :  { %v2632_v42 = vpop.xlane.xlu0 %2631  ;;  %v2635_v43 = vpop.xlane.xlu1 %2634 }
 0x233   :  { %4908 = vpow2.f32 %v2659_v39  ;;  %v2652_v45 = vsub.f32 %v2620_v11, %v2632_v42  ;;  %v2653_v47 = vsub.f32 %v2621_v14, %v2635_v43  ;;  %v4327_v42 = vld [vmem:[%s5728_s3 + $0x15] ss:$0 sm:$0xff]  ;;  %v1768_v43 = vadd.f32 %v4326_v35, %v5367_v44  ;;  %v3319_v35 = vld [vmem:[%s5729_s4 + $0xa0] sm:$0xff] }
 0x235   :  { %v2661_v48 = vmul.f32 1.442695, %v2652_v45  ;;  %v2663_v49 = vmul.f32 1.442695, %v2653_v47  ;;  %v4328_v47 = vld [vmem:[%s5728_s3 + $0x16] ss:$0 sm:$0xff] }
 0x236   :  { %v2638_v50 = vpop.xlane.xlu1 %2637  ;;  %v2641_v51 = vpop.xlane.xlu0 %2640 }
 0x237   :  { %4910 = vpow2.f32 %v2661_v48  ;;  %v2654_v53 = vsub.f32 %v2622_v16, %v2638_v50  ;;  %v2655_v54 = vsub.f32 %v2623_v22, %v2641_v51  ;;  %v4329_v50 = vld [vmem:[%s5728_s3 + $0x17] ss:$0 sm:$0xff]  ;;  %v1914_v51 = vadd.f32 %v4328_v47, %v5369_v46  ;;  %v3327_v47 = vld [vmem:[%s5729_s4 + $0xe0] sm:$0xff] }
 0x238   :  { %4912 = vpow2.f32 %v2663_v49  ;;  %v1841_v49 = vadd.f32 %v4327_v42, %v5360_v37  ;;  %v3329_v42 = vld [vmem:[%s5729_s4 + $0xf0] sm:$0xff] }
 0x239   :  { %v2665_v55 = vmul.f32 1.442695, %v2654_v53  ;;  %v2667_v56 = vmul.f32 1.442695, %v2655_v54 }
 0x23a   :  { %v2644_v58 = vpop.xlane.xlu1 %2643  ;;  %v2647_v59 = vpop.xlane.xlu0 %2646 }
 0x23b   :  { %4914 = vpow2.f32 %v2665_v55  ;;  %v2656_v60 = vsub.f32 %v2624_v28, %v2644_v58  ;;  %v2657_v61 = vsub.f32 %v2625_v30, %v2647_v59  ;;  %v1622_v30 = vadd.f32 %v4324_v26, %v5362_v40  ;;  %v3306_v59 = vld [vmem:[%s5729_s4 + $0x38] sm:$0xff] }
 0x23c   :  { %4916 = vpow2.f32 %v2667_v56  ;;  %v1987_v55 = vadd.f32 %v4329_v50, %v5365_v41  ;;  %v3302_v56 = vld [vmem:[%s5729_s4 + $0x18] sm:$0xff] }
 0x23d   :  { %v2669_v62 = vmul.f32 1.442695, %v2656_v60  ;;  %v2671_v63 = vmul.f32 1.442695, %v2657_v61  ;;  %v3301_v60 = vld [vmem:[%s5729_s4 + $0x10] sm:$0xff] }
 0x23e   :  { %v2650_v0 = vpop.xlane.xlu1 %2649  ;;  %v3305_v61 = vld [vmem:[%s5729_s4 + $0x30] sm:$0xff] }
 0x23f   :  { %4918 = vpow2.f32 %v2669_v62  ;;  %v2658_v1 = vsub.f32 %v2626_v34, %v2650_v0  ;;  %v3300_v62 = vld [vmem:[%s5729_s4 + $0x8] sm:$0xff]  ;;  %v3299_v0 = vld [vmem:[%s5729_s4] sm:$0xff] }
 0x240   :  { %v4909_v3 = vpop.eup %4908  ;;  %4920 = vpow2.f32 %v2671_v63  ;;  %v3304_v63 = vld [vmem:[%s5729_s4 + $0x28] sm:$0xff] }
 0x241   :  { %v2673_v4 = vmul.f32 1.442695, %v2658_v1  ;;  %v2675_v5 = vsel %vm1990_vm2, %v4909_v3, 0.0  ;;  %v3303_v1 = vld [vmem:[%s5729_s4 + $0x20] sm:$0xff] }
 0x242   :  { %2676 = vadd.xlane.f32.xlu0 %v2675_v5 }
 0x243   :  { %4922 = vpow2.f32 %v2673_v4 }
 0x244   :  { %v4911_v6 = vpop.eup %4910 }
 0x245   :  { %v4913_v7 = vpop.eup %4912  ;;  %v2678_v8 = vsel %vm1990_vm2, %v4911_v6, 0.0 }
 0x246   :  { %2679 = vadd.xlane.f32.xlu1 %v2678_v8  ;;  %v2681_v9 = vsel %vm1990_vm2, %v4913_v7, 0.0 }
 0x247   :  { %2682 = vadd.xlane.f32.xlu0 %v2681_v9 }
 0x248   :  { %v4915_v10 = vpop.eup %4914 }
 0x249   :  { %v4917_v11 = vpop.eup %4916  ;;  %v2684_v12 = vsel %vm1990_vm2, %v4915_v10, 0.0 }
 0x24a   :  { %2685 = vadd.xlane.f32.xlu1 %v2684_v12  ;;  %v2687_v13 = vsel %vm1990_vm2, %v4917_v11, 0.0  ;;  %v3308_v12 = vld [vmem:[%s5729_s4 + $0x48] sm:$0xff] }
 0x24b   :  { %2688 = vadd.xlane.f32.xlu0 %v2687_v13  ;;  %v3313_v13 = vld [vmem:[%s5729_s4 + $0x70] sm:$0xff] }
 0x24c   :  { %v5397_v14 = vpop.eup %4918 }
 0x24d   :  { %v5399_v15 = vpop.eup %4920  ;;  %v2690_v16 = vsel %vm1990_vm2, %v5397_v14, 0.0 }
 0x24e   :  { %2691 = vadd.xlane.f32.xlu1 %v2690_v16  ;;  %v2693_v17 = vsel %vm1990_vm2, %v5399_v15, 0.0 }
 0x24f   :  { %2694 = vadd.xlane.f32.xlu0 %v2693_v17 }
 0x250   :  { %v5405_v18 = vpop.eup %4922 }
 0x251   :  { %v2696_v19 = vsel %vm1990_vm2, %v5405_v18, 0.0 }
 0x252   :  { %2697 = vadd.xlane.f32.xlu1 %v2696_v19  ;;  %v3312_v19 = vld [vmem:[%s5729_s4 + $0x68] sm:$0xff] }
 0x2cb   :  { %v2677_v20 = vpop.xlane.xlu0 %2676 }
 0x2cc   :  { %4924 = vrcp.f32 %v2677_v20 }
 0x2cf   :  { %v2680_v21 = vpop.xlane.xlu1 %2679 }
 0x2d0   :  { %4926 = vrcp.f32 %v2680_v21  ;;  %v2683_v22 = vpop.xlane.xlu0 %2682 }
 0x2d1   :  { %4928 = vrcp.f32 %v2683_v22 }
 0x2d3   :  { %v2686_v23 = vpop.xlane.xlu1 %2685 }
 0x2d4   :  { %4930 = vrcp.f32 %v2686_v23  ;;  %v2689_v24 = vpop.xlane.xlu0 %2688 }
 0x2d5   :  { %4932 = vrcp.f32 %v2689_v24  ;;  %v3311_v24 = vld [vmem:[%s5729_s4 + $0x60] sm:$0xff] }
 0x2d7   :  { %v2692_v25 = vpop.xlane.xlu1 %2691 }
 0x2d8   :  { %4934 = vrcp.f32 %v2692_v25  ;;  %v2695_v27 = vpop.xlane.xlu0 %2694  ;;  %v3318_v25 = vld [vmem:[%s5729_s4 + $0x98] sm:$0xff] }
 0x2d9   :  { %v4925_v28 = vpop.eup %4924  ;;  %4936 = vrcp.f32 %v2695_v27 }
 0x2da   :  { %v2707_v29 = vmul.f32 %v4925_v28, %v4909_v3  ;;  %v3310_v3 = vld [vmem:[%s5729_s4 + $0x58] sm:$0xff]  ;;  %v3317_v28 = vld [vmem:[%s5729_s4 + $0x90] sm:$0xff] }
 0x2db   :  { %v2698_v31 = vpop.xlane.xlu1 %2697 }
 0x2dc   :  { %4938 = vrcp.f32 %v2698_v31  ;;  %4745 = vmatmul.mubr.msk.f32.vlgmr.msra.gmra.mxu0 %vm1990_vm2, %v2707_v29  ;;  %v3322_v29 = vld [vmem:[%s5729_s4 + $0xb8] sm:$0xff]  ;;  %v3321_v31 = vld [vmem:[%s5729_s4 + $0xb0] sm:$0xff] }
 0x2dd   :  { %v4927_v34 = vpop.eup %4926  ;;  %4753 = vmatpush3.msra.mxu0 %v1622_v30  ;;  %4754 = vmatprep.mubr.msk.f32.mxu0 %vm4973_vm1, %v4972_v2  ;;  %v3316_v30 = vld [vmem:[%s5729_s4 + $0x88] sm:$0xff] }
 0x2de   :  { %v4929_v36 = vpop.eup %4928  ;;  %4762 = vmatprep.subr.mxu0 %v4972_v2  ;;  %v2708_v40 = vmul.f32 %v4927_v34, %v4911_v6  ;;  %v3309_v6 = vld [vmem:[%s5729_s4 + $0x50] sm:$0xff]  ;;  %v3320_v34 = vld [vmem:[%s5729_s4 + $0xa8] sm:$0xff] }
 0x2df   :  { %v2709_v39 = vmul.f32 %v4929_v36, %v4913_v7  ;;  %v3314_v7 = vld [vmem:[%s5729_s4 + $0x78] sm:$0xff] }
 0x2e0   :  { %4750 = vmatmul.mubr.msk.f32.vlgmr.msra.gmra.mxu1 %vm1990_vm2, %v2708_v40  ;;  %v3326_v36 = vld [vmem:[%s5729_s4 + $0xd8] sm:$0xff]  ;;  %v3325_v40 = vld [vmem:[%s5729_s4 + $0xd0] sm:$0xff] }
 0x2e1   :  { %v4931_v45 = vpop.eup %4930  ;;  %4755 = vmatmul.mubr.msk.f32.vlgmr.msra.gmra.mxu0 %vm1990_vm2, %v2709_v39  ;;  %4758 = vmatpush3.msra.mxu1 %v1695_v38  ;;  %v3330_v38 = vld [vmem:[%s5729_s4 + $0xf8] sm:$0xff]  ;;  %v3324_v39 = vld [vmem:[%s5729_s4 + $0xc8] sm:$0xff] }
 0x2e2   :  { %v4933_v48 = vpop.eup %4932  ;;  %4763 = vmatpush3.msra.mxu0 %v1768_v43  ;;  %4759 = vmatprep.mubr.msk.f32.mxu1 %vm4973_vm1, %v4972_v2  ;;  %v2710_v32 = vmul.f32 %v4931_v45, %v4915_v10  ;;  %v3323_v43 = vld [vmem:[%s5729_s4 + $0xc0] sm:$0xff]  ;;  %v3328_v45 = vld [vmem:[%s5729_s4 + $0xe8] sm:$0xff] }
 0x2e3   :  { %4764 = vmatprep.mubr.msk.f32.mxu0 %vm4973_vm1, %v4972_v2  ;;  %4767 = vmatprep.subr.mxu1 %v4972_v2  ;;  %v2711_v44 = vmul.f32 %v4933_v48, %v4917_v11 }
 0x2e4   :  { %4772 = vmatprep.subr.mxu0 %v4972_v2  ;;  %4760 = vmatmul.mubr.msk.f32.vlgmr.msra.gmra.mxu1 %vm1990_vm2, %v2710_v32 }
 0x2e5   :  { %v4935_v53 = vpop.eup %4934  ;;  %4765 = vmatmul.mubr.msk.f32.vlgmr.msra.gmra.mxu0 %vm1990_vm2, %v2711_v44  ;;  %4768 = vmatpush3.msra.mxu1 %v1841_v49 }
 0x2e6   :  { %v4937_v37 = vpop.eup %4936  ;;  %4773 = vmatpush3.msra.mxu0 %v1914_v51  ;;  %4769 = vmatprep.mubr.msk.f32.mxu1 %vm4973_vm1, %v4972_v2  ;;  %v2712_v54 = vmul.f32 %v4935_v53, %v5397_v14 }
 0x2e7   :  { %4774 = vmatprep.mubr.msk.f32.mxu0 %vm4973_vm1, %v4972_v2  ;;  %4777 = vmatprep.subr.mxu1 %v4972_v2  ;;  %v2713_v46 = vmul.f32 %v4937_v37, %v5399_v15 }
 0x2e8   :  { %4770 = vmatmul.mubr.msk.f32.vlgmr.msra.gmra.mxu1 %vm1990_vm2, %v2712_v54  ;;  %4782 = vmatprep.subr.mxu0 %v4972_v2 }
 0x2e9   :  { %v4939_v58 = vpop.eup %4938  ;;  %4775 = vmatmul.mubr.msk.f32.vlgmr.msra.gmra.mxu0 %vm1990_vm2, %v2713_v46  ;;  %4778 = vmatpush3.msra.mxu1 %v1987_v55 }
 0x2ea   :  { %4779 = vmatprep.mubr.msk.f32.mxu1 %vm4973_vm1, %v4972_v2  ;;  %v2714_v41 = vmul.f32 %v4939_v58, %v5405_v18  ;;  %4783 = vmatpush3.xpose.msk.msra.mxu0 %vm1990_vm2, %v3302_v56  ;;  %v3307_v18 = vld [vmem:[%s5729_s4 + $0x40] sm:$0xff] }
 0x2eb   :  { %4784 = vmatprep.subr.mxu0 %v4972_v2  ;;  %4793 = vmatprep.subr.mxu1 %v4972_v2  ;;  %v5650_v56 = vld [vmem:[%s5732_s7] sm:$0xff] }
 0x2ec   :  { %4780 = vmatmul.mubr.msk.f32.vlgmr.msra.gmra.mxu1 %vm1990_vm2, %v2714_v41  ;;  %4790 = vmatprep.mubr.msk.f32.mxu0 %vm4973_vm1, %v4972_v2 }
 0x2ed   :  { %4794 = vmatpush3.xpose.msk.msra.mxu1 %vm1990_vm2, %v3306_v59  ;;  %4801 = vmatprep.mubr.msk.f32.mxu1 %vm4973_vm1, %v4972_v2  ;;  %v5654_v59 = vrot.slane %v5650_v56, %v5380_v57 }
 0x2ee   :  { %4785 = vmatpush3.xpose.msk.msra.mxu0 %vm1990_vm2, %v3301_v60  ;;  %4795 = vmatprep.subr.mxu1 %v4972_v2 }
 0x2ef   :  { %4786 = vmatprep.subr.mxu0 %v4972_v2 }
 0x2f1   :  { %4796 = vmatpush3.xpose.msk.msra.mxu1 %vm1990_vm2, %v3305_v61 }
 0x2f2   :  { %4787 = vmatpush3.xpose.msk.msra.mxu0 %vm1990_vm2, %v3300_v62  ;;  %4797 = vmatprep.subr.mxu1 %v4972_v2 }
 0x2f3   :  { %4788 = vmatprep.subr.mxu0 %v4972_v2 }
 0x2f5   :  { %4798 = vmatpush3.xpose.msk.msra.mxu1 %vm1990_vm2, %v3304_v63 }
 0x2f6   :  { %4789 = vmatpush3.xpose.msk.msra.mxu0 %vm1990_vm2, %v3299_v0  ;;  %4799 = vmatprep.subr.mxu1 %v4972_v2 }
 0x2f7   :  { %4804 = vmatprep.subr.mxu0 %v4972_v2 }
 0x2f9   :  { %4800 = vmatpush3.xpose.msk.msra.mxu1 %vm1990_vm2, %v3303_v1 }
 0x2fa   :  { %4815 = vmatprep.subr.mxu1 %v4972_v2 }
 0x39c   :  { %v2784_v4 = vpop.f32.mrf.mxu0 }
 0x39d   :  { %4791 = vmatmul.mubr.msk.f32.vlgmr.msra.gmra.mxu0 %vm1990_vm2, %v2784_v4 }
 0x39e   :  { %4805 = vmatpush3.xpose.msk.msra.mxu0 %vm1990_vm2, %v3310_v3  ;;  %v4746_v5 = vpop.f32.mrf.mxu0  ;;  %4812 = vmatprep.mubr.msk.f32.mxu0 %vm4973_vm1, %v4972_v2 }
 0x39f   :  { %4806 = vmatprep.subr.mxu0 %v4972_v2  ;;  %v4948_v5 = vld [vmem:[%s5725_s0] sm:$0xff] }
 0x3a0   :  { %v2857_v8 = vpop.f32.mrf.mxu1 }
 0x3a1   :  { %v2930_v9 = vpop.f32.mrf.mxu0  ;;  %4802 = vmatmul.mubr.msk.f32.vlgmr.msra.gmra.mxu1 %vm1990_vm2, %v2857_v8 }
 0x3a2   :  { %4807 = vmatpush3.xpose.msk.msra.mxu0 %vm1990_vm2, %v3309_v6  ;;  %4816 = vmatpush3.xpose.msk.msra.mxu1 %vm1990_vm2, %v3314_v7  ;;  %v4751_v10 = vpop.f32.mrf.mxu1 }
 0x3a3   :  { %v4756_v11 = vpop.f32.mrf.mxu0  ;;  %4808 = vmatprep.subr.mxu0 %v4972_v2  ;;  %4817 = vmatprep.subr.mxu1 %v4972_v2 }
 0x3a4   :  { %v3003_v14 = vpop.f32.mrf.mxu1  ;;  %4823 = vmatprep.mubr.msk.f32.mxu1 %vm4973_vm1, %v4972_v2 }
 0x3a5   :  { %v3076_v15 = vpop.f32.mrf.mxu0 }
 0x3a6   :  { %4809 = vmatpush3.xpose.msk.msra.mxu0 %vm1990_vm2, %v3308_v12  ;;  %4818 = vmatpush3.xpose.msk.msra.mxu1 %vm1990_vm2, %v3313_v13  ;;  %v4761_v16 = vpop.f32.mrf.mxu1 }
 0x3a7   :  { %v4766_v17 = vpop.f32.mrf.mxu0  ;;  %4810 = vmatprep.subr.mxu0 %v4972_v2  ;;  %4819 = vmatprep.subr.mxu1 %v4972_v2 }
 0x3a8   :  { %v3149_v20 = vpop.f32.mrf.mxu1 }
 0x3a9   :  { %v5543_v21 = vpop.f32.mrf.mxu0 }
 0x3aa   :  { %4811 = vmatpush3.xpose.msk.msra.mxu0 %vm1990_vm2, %v3307_v18  ;;  %4820 = vmatpush3.xpose.msk.msra.mxu1 %vm1990_vm2, %v3312_v19  ;;  %v4771_v22 = vpop.f32.mrf.mxu1 }
 0x3ab   :  { %v4776_v23 = vpop.f32.mrf.mxu0  ;;  %4821 = vmatprep.subr.mxu1 %v4972_v2  ;;  %4826 = vmatprep.subr.mxu0 %v4972_v2  ;;  %v4067_v22 = vld [vmem:[%s5730_s5 + $0x18] sm:$0xff] }
 0x3ac   :  { %v3295_v26 = vpop.f32.mrf.mxu1  ;;  %v4066_v23 = vld [vmem:[%s5730_s5 + $0x10] sm:$0xff] }
 0x3ad   :  { %4813 = vmatmul.mubr.msk.f32.vlgmr.msra.gmra.mxu0 %vm1990_vm2, %v2930_v9  ;;  %v4949_v9 = vld [vmem:[%s5725_s0 + $0x8] sm:$0xff] }
 0x3ae   :  { %4822 = vmatpush3.xpose.msk.msra.mxu1 %vm1990_vm2, %v3311_v24  ;;  %4827 = vmatpush3.xpose.msk.msra.mxu0 %vm1990_vm2, %v3318_v25  ;;  %v4781_v27 = vpop.f32.mrf.mxu1  ;;  %v4065_v24 = vld [vmem:[%s5730_s5 + $0x8] sm:$0xff]  ;;  %v4064_v25 = vld [vmem:[%s5730_s5] sm:$0xff] }
 0x3af   :  { %4828 = vmatprep.subr.mxu0 %v4972_v2  ;;  %4837 = vmatprep.subr.mxu1 %v4972_v2  ;;  %v4161_v27 = vld [vmem:[%s5731_s6 + $0x30] sm:$0xff] }
 0x3b0   :  { %4834 = vmatprep.mubr.msk.f32.mxu0 %vm4973_vm1, %v4972_v2 }
 0x3b1   :  { %4824 = vmatmul.mubr.msk.f32.vlgmr.msra.gmra.mxu1 %vm1990_vm2, %v3003_v14 }
 0x3b2   :  { %4829 = vmatpush3.xpose.msk.msra.mxu0 %vm1990_vm2, %v3317_v28  ;;  %4838 = vmatpush3.xpose.msk.msra.mxu1 %vm1990_vm2, %v3322_v29  ;;  %v4160_v28 = vld [vmem:[%s5731_s6 + $0x28] sm:$0xff]  ;;  %v4159_v29 = vld [vmem:[%s5731_s6 + $0x20] sm:$0xff] }
 0x3b3   :  { %4830 = vmatprep.subr.mxu0 %v4972_v2  ;;  %4839 = vmatprep.subr.mxu1 %v4972_v2 }
 0x3b4   :  { %4845 = vmatprep.mubr.msk.f32.mxu1 %vm4973_vm1, %v4972_v2 }
 0x3b6   :  { %4831 = vmatpush3.xpose.msk.msra.mxu0 %vm1990_vm2, %v3316_v30  ;;  %4840 = vmatpush3.xpose.msk.msra.mxu1 %vm1990_vm2, %v3321_v31  ;;  %v4158_v30 = vld [vmem:[%s5731_s6 + $0x18] sm:$0xff] }
 0x3b7   :  { %4832 = vmatprep.subr.mxu0 %v4972_v2  ;;  %4841 = vmatprep.subr.mxu1 %v4972_v2 }
 0x3ba   :  { %4833 = vmatpush3.xpose.msk.msra.mxu0 %vm1990_vm2, %v3315_v33  ;;  %4842 = vmatpush3.xpose.msk.msra.mxu1 %vm1990_vm2, %v3320_v34 }
 0x3bb   :  { %4843 = vmatprep.subr.mxu1 %v4972_v2  ;;  %4848 = vmatprep.subr.mxu0 %v4972_v2 }
 0x3bd   :  { %4835 = vmatmul.mubr.msk.f32.vlgmr.msra.gmra.mxu0 %vm1990_vm2, %v3076_v15 }
 0x3be   :  { %4844 = vmatpush3.xpose.msk.msra.mxu1 %vm1990_vm2, %v3319_v35  ;;  %4849 = vmatpush3.xpose.msk.msra.mxu0 %vm1990_vm2, %v3326_v36 }
 0x3bf   :  { %4850 = vmatprep.subr.mxu0 %v4972_v2  ;;  %4859 = vmatprep.subr.mxu1 %v4972_v2 }
 0x3c0   :  { %4856 = vmatprep.mubr.msk.f32.mxu0 %vm4973_vm1, %v4972_v2 }
 0x3c1   :  { %4846 = vmatmul.mubr.msk.f32.vlgmr.msra.gmra.mxu1 %vm1990_vm2, %v3149_v20 }
 0x3c2   :  { %4851 = vmatpush3.xpose.msk.msra.mxu0 %vm1990_vm2, %v3325_v40  ;;  %4860 = vmatpush3.xpose.msk.msra.mxu1 %vm1990_vm2, %v3330_v38  ;;  %v4054_v38 = vsub.s32 1, %v5377_v52 }
 0x3c3   :  { %4852 = vmatprep.subr.mxu0 %v4972_v2  ;;  %4861 = vmatprep.subr.mxu1 %v4972_v2 }
 0x3c4   :  { %4867 = vmatprep.mubr.msk.f32.mxu1 %vm4973_vm1, %v4972_v2 }
 0x3c6   :  { %4853 = vmatpush3.xpose.msk.msra.mxu0 %vm1990_vm2, %v3324_v39  ;;  %4862 = vmatpush3.xpose.msk.msra.mxu1 %vm1990_vm2, %v3329_v42  ;;  %v4060_v39 = vsub.s32 2, %v5377_v52  ;;  %v4055_v42 = vrot.slane %v5650_v56, %v4054_v38 }
 0x3c7   :  { %4854 = vmatprep.subr.mxu0 %v4972_v2  ;;  %4863 = vmatprep.subr.mxu1 %v4972_v2 }
 0x3ca   :  { %4855 = vmatpush3.xpose.msk.msra.mxu0 %vm1990_vm2, %v3323_v43  ;;  %4864 = vmatpush3.xpose.msk.msra.mxu1 %vm1990_vm2, %v3328_v45 }
 0x3cb   :  { %4865 = vmatprep.subr.mxu1 %v4972_v2  ;;  %4870 = vmatprep.subr.mxu0 %v4067_v22 }
 0x3cd   :  { %4857 = vmatmul.mubr.msk.f32.vlgmr.msra.gmra.mxu0 %vm1990_vm2, %v5543_v21 }
 0x3ce   :  { %4866 = vmatpush3.xpose.msk.msra.mxu1 %vm1990_vm2, %v3327_v47  ;;  %4871 = vmatpush3.msra.mxu0 %v4067_v22  ;;  %v4061_v47 = vrot.slane %v5650_v56, %v4060_v39  ;;  %v4278_v22 = vsub.s32 3, %v5377_v52 }
 0x3cf   :  { %4872 = vmatprep.subr.mxu0 %v4066_v23 }
 0x3d0   :  { %4873 = vmatpush3.msra.mxu0 %v4066_v23  ;;  %v4284_v23 = vsub.s32 4, %v5377_v52 }
 0x3d1   :  { %4868 = vmatmul.mubr.msk.f32.vlgmr.msra.gmra.mxu1 %vm1990_vm2, %v3295_v26  ;;  %4874 = vmatprep.subr.mxu0 %v4065_v24  ;;  %v4162_v26 = vld [vmem:[%s5731_s6 + $0x38] sm:$0xff] }
 0x3d2   :  { %4875 = vmatpush3.msra.mxu0 %v4065_v24  ;;  %4881 = vmatprep.subr.mxu1 %v4162_v26  ;;  %v4279_v24 = vrot.slane %v5650_v56, %v4278_v22 }
 0x3d3   :  { %4876 = vmatprep.subr.mxu0 %v4064_v25  ;;  %4882 = vmatpush3.msra.mxu1 %v4162_v26 }
 0x3d4   :  { %4877 = vmatpush3.msra.mxu0 %v4064_v25  ;;  %4883 = vmatprep.subr.mxu1 %v4161_v27 }
 0x3d5   :  { %4884 = vmatpush3.msra.mxu1 %v4161_v27  ;;  %v4285_v27 = vrot.slane %v5650_v56, %v4284_v23 }
 0x3d6   :  { %4885 = vmatprep.subr.mxu1 %v4160_v28 }
 0x3d7   :  { %4886 = vmatpush3.msra.mxu1 %v4160_v28 }
 0x3d8   :  { %4887 = vmatprep.subr.mxu1 %v4159_v29 }
 0x3d9   :  { %4888 = vmatpush3.msra.mxu1 %v4159_v29 }
 0x3da   :  { %4889 = vmatprep.subr.mxu1 %v4158_v30 }
 0x3db   :  { %4890 = vmatpush3.msra.mxu1 %v4158_v30 }
 0x45d   :  { %v3412_v48 = vpop.f32.mrf.mxu0 }
 0x45f   :  { %v4792_v32 = vpop.f32.mrf.mxu0 }
 0x461   :  { %v3497_v49 = vpop.f32.mrf.mxu1 }
 0x463   :  { %v4803_v44 = vpop.f32.mrf.mxu1 }
 0x46d   :  { %v3582_v50 = vpop.f32.mrf.mxu0 }
 0x46e   :  { %v4011_v58 = vadd.f32 %v3582_v50, %v3412_v48 }
 0x46f   :  { %v4814_v51 = vpop.f32.mrf.mxu0 }
 0x471   :  { %v3667_v53 = vpop.f32.mrf.mxu1 }
 0x472   :  { %v4012_v61 = vadd.f32 %v3667_v53, %v3497_v49  ;;  %v4157_v53 = vld [vmem:[%s5731_s6 + $0x10] sm:$0xff] }
 0x473   :  { %v4825_v37 = vpop.f32.mrf.mxu1  ;;  %4891 = vmatprep.subr.mxu1 %v4157_v53 }
 0x474   :  { %4892 = vmatpush3.msra.mxu1 %v4157_v53  ;;  %v4156_v37 = vld [vmem:[%s5731_s6 + $0x8] sm:$0xff] }
 0x475   :  { %4893 = vmatprep.subr.mxu1 %v4156_v37 }
 0x476   :  { %4894 = vmatpush3.msra.mxu1 %v4156_v37 }
 0x47d   :  { %v3752_v2 = vpop.f32.mrf.mxu0 }
 0x47e   :  { %v4013_v41 = vadd.f32 %v4011_v58, %v3752_v2  ;;  %v4155_v2 = vld [vmem:[%s5731_s6] sm:$0xff]  ;;  %s4977_s6 = smov [#allocation2]  }
 0x47f   :  { %v4836_v54 = vpop.f32.mrf.mxu0  ;;  %4895 = vmatprep.subr.mxu1 %v4155_v2  ;;  %s4295_s9 = sshll.u32 %s4977_s6, 4  ;;  %s4296_s9 = int_to_ptr.vmem [resolvable:$true] %s4295_s9 }
 0x480   :  { %4896 = vmatpush3.msra.mxu1 %v4155_v2  ;;  %s4950_s7 = scalar_lea.vmem %s4296_s9, 256  ;;  %p4955_p1 = scmp.lt.s32.totalorder %s4296_s9, %s4296_s9 }
 0x481   :  { %v3837_v55 = vpop.f32.mrf.mxu1  ;;  %p4951_p0 = scmp.ne.s32.totalorder %s4296_s9, %s4950_s7  ;;  %p4956_p2 = scmp.lt.s32.totalorder %s4950_s7, %s4950_s7 }
 0x482   :  { %v4014_v0 = vadd.f32 %v4012_v61, %v3837_v55 }
 0x483   :  { %v4847_v46 = vpop.f32.mrf.mxu1  ;;  %p4957_p3 = por %p4956_p2, %p4955_p1 }
 0x485   :  { %p4958_p4 = pnand %p4957_p3, %p4951_p0 }
 0x48d   :  { %v3922_v60 = vpop.f32.mrf.mxu0 }
 0x48e   :  { %v4015_v62 = vadd.f32 %v4013_v41, %v3922_v60 }
 0x48f   :  { %v4858_v63 = vpop.f32.mrf.mxu0 }
 0x490   :  { %v4021_v1 = vadd.f32 %v5654_v59, %v4015_v62 }
 0x491   :  { %v4007_v3 = vpop.f32.mrf.mxu1 }
 0x492   :  { %v4016_v4 = vadd.f32 %v4014_v0, %v4007_v3  ;;  %v4023_v6 = vadd.f32 %v4948_v5, %v4021_v1 }
 0x493   :  { %v4869_v7 = vpop.f32.mrf.mxu1 }
 0x494   :  { %v4022_v8 = vadd.f32 %v5654_v59, %v4016_v4  ;;  %v4025_v57 = vsel %vm231_vm0, %v4023_v6, 0.0 }
 0x495   :  { %4026 = vadd.xlane.f32.xlu0 %v4025_v57 }
 0x496   :  { %v4024_v10 = vadd.f32 %v4949_v9, %v4022_v8 }
 0x498   :  { %v4028_v11 = vsel %vm231_vm0, %v4024_v10, 0.0 }
 0x499   :  { %4029 = vadd.xlane.f32.xlu1 %v4028_v11 }
 0x51e   :  { %v4027_v12 = vpop.xlane.xlu0 %4026 }
 0x51f   :  { %v4032_v13 = vmul.f32 0.03125, %v4027_v12 }
 0x521   :  { %v4034_v14 = vsub.f32 %v4023_v6, %v4032_v13 }
 0x522   :  { %v4030_v15 = vpop.xlane.xlu1 %4029 }
 0x523   :  { %v4033_v16 = vmul.f32 0.03125, %v4030_v15  ;;  %v4036_v17 = vmul.f32 %v4034_v14, %v4034_v14 }
 0x525   :  { %v4035_v18 = vsub.f32 %v4024_v10, %v4033_v16  ;;  %v4038_v19 = vsel %vm231_vm0, %v4036_v17, 0.0 }
 0x526   :  { %4039 = vadd.xlane.f32.xlu0 %v4038_v19 }
 0x527   :  { %v4037_v20 = vmul.f32 %v4035_v18, %v4035_v18 }
 0x529   :  { %v4041_v21 = vsel %vm231_vm0, %v4037_v20, 0.0 }
 0x52a   :  { %4042 = vadd.xlane.f32.xlu1 %v4041_v21 }
 0x53b   :  { %4163 = vrot.lane.b32.xlu1 %v5654_v59, %s4976_s30 }
 0x53c   :  { %4069 = vrot.lane.b32.xlu0 %v5654_v59, %s4975_s20 }
 0x5af   :  { %v4040_v31 = vpop.xlane.xlu0 %4039 }
 0x5b0   :  { %v4044_v33 = vmul.f32 0.03125, %v4040_v31 }
 0x5b2   :  { %v4046_v34 = vadd.f32 1e-05, %v4044_v33 }
 0x5b3   :  { %v4043_v35 = vpop.xlane.xlu1 %4042  ;;  %v4070_v54 = vpop.permute.xlu0 %4069 }
 0x5b4   :  { %4940 = vrsqrt.f32 %v4046_v34  ;;  %v4045_v36 = vmul.f32 0.03125, %v4043_v35 }
 0x5b6   :  { %v4047_v40 = vadd.f32 1e-05, %v4045_v36 }
 0x5b7   :  { %v4164_v62 = vpop.permute.xlu1 %4163 }
 0x5b8   :  { %4942 = vrsqrt.f32 %v4047_v40 }
 0x5c1   :  { %v4941_v43 = vpop.eup %4940 }
 0x5c2   :  { %v4050_v45 = vmul.f32 %v4941_v43, %v4034_v14 }
 0x5c4   :  { %v4056_v48 = vmul.f32 %v4055_v42, %v4050_v45 }
 0x5c5   :  { %v4943_v32 = vpop.eup %4942 }
 0x5c6   :  { %v4051_v49 = vmul.f32 %v4943_v32, %v4035_v18  ;;  %v4062_v44 = vadd.f32 %v4061_v47, %v4056_v48 }
 0x5c8   :  { %v4057_v50 = vmul.f32 %v4055_v42, %v4051_v49  ;;  %4878 = vmatprep.mubr.msk.f32.mxu0 %vm231_vm0, %v4062_v44 }
 0x5ca   :  { %v4063_v51 = vadd.f32 %v4061_v47, %v4057_v50 }
 0x5cc   :  { %4879 = vmatmul.mubr.msk.f32.vlgmr.msra.gmra.mxu0 %vm231_vm0, %v4063_v51 }
 0x68c   :  { %v4880_v55 = vpop.f32.mrf.mxu0 }
 0x68d   :  { %v4150_v46 = vadd.f32 %v4880_v55, %v4070_v54 }
 0x68e   :  { %v4144_v58 = vpop.f32.mrf.mxu0 }
 0x68f   :  { %v4145_v41 = vadd.f32 %v4144_v58, %v4070_v54  ;;  %v4154_v61 = vmax.f32 %v4150_v46, 0.0 }
 0x691   :  { %v4153_v60 = vmax.f32 %v4145_v41, 0.0 }
 0x693   :  { %4897 = vmatprep.mubr.msk.f32.mxu1 %vm4166_vm5, %v4153_v60 }
 0x694   :  { %4898 = vmatmul.mubr.msk.f32.vlgmr.msra.gmra.mxu1 %vm4166_vm5, %v4154_v61 }
 0x754   :  { %v4899_v63 = vpop.f32.mrf.mxu1 }
 0x755   :  { %v4245_v0 = vadd.f32 %v4899_v63, %v4164_v62 }
 0x756   :  { %v4239_v1 = vpop.f32.mrf.mxu1 }
 0x757   :  { %v4240_v3 = vadd.f32 %v4239_v1, %v4164_v62  ;;  %v4249_v4 = vadd.f32 %v4245_v0, %v4063_v51 }
 0x759   :  { %v4253_v5 = vsel %vm231_vm0, %v4249_v4, 0.0  ;;  %v4248_v6 = vadd.f32 %v4240_v3, %v4062_v44 }
 0x75a   :  { %4254 = vadd.xlane.f32.xlu0 %v4253_v5 }
 0x75b   :  { %v4250_v59 = vsel %vm231_vm0, %v4248_v6, 0.0 }
 0x75c   :  { %4251 = vadd.xlane.f32.xlu1 %v4250_v59 }
 0x7e3   :  { %v4255_v7 = vpop.xlane.xlu0 %4254 }
 0x7e4   :  { %v4257_v8 = vmul.f32 0.03125, %v4255_v7 }
 0x7e5   :  { %v4252_v57 = vpop.xlane.xlu1 %4251 }
 0x7e6   :  { %v4259_v9 = vsub.f32 %v4249_v4, %v4257_v8  ;;  %v4256_v10 = vmul.f32 0.03125, %v4252_v57 }
 0x7e8   :  { %v4258_v11 = vsub.f32 %v4248_v6, %v4256_v10  ;;  %v4261_v12 = vmul.f32 %v4259_v9, %v4259_v9 }
 0x7ea   :  { %v4265_v13 = vsel %vm231_vm0, %v4261_v12, 0.0  ;;  %v4260_v14 = vmul.f32 %v4258_v11, %v4258_v11 }
 0x7eb   :  { %4266 = vadd.xlane.f32.xlu1 %v4265_v13 }
 0x7ec   :  { %v4262_v15 = vsel %vm231_vm0, %v4260_v14, 0.0 }
 0x7ed   :  { %4263 = vadd.xlane.f32.xlu0 %v4262_v15 }
 0x874   :  { %v4267_v16 = vpop.xlane.xlu1 %4266 }
 0x875   :  { %v4269_v17 = vmul.f32 0.03125, %v4267_v16 }
 0x876   :  { %v4264_v18 = vpop.xlane.xlu0 %4263 }
 0x877   :  { %v4271_v19 = vadd.f32 1e-05, %v4269_v17  ;;  %v4268_v20 = vmul.f32 0.03125, %v4264_v18 }
 0x879   :  { %4944 = vrsqrt.f32 %v4271_v19  ;;  %v4270_v21 = vadd.f32 1e-05, %v4268_v20 }
 0x87b   :  { %4946 = vrsqrt.f32 %v4270_v21 }
 0x886   :  { %v4945_v25 = vpop.eup %4944 }
 0x887   :  { %v4275_v26 = vmul.f32 %v4945_v25, %v4259_v9 }
 0x888   :  { %v4947_v28 = vpop.eup %4946 }
 0x889   :  { %v4274_v29 = vmul.f32 %v4947_v28, %v4258_v11  ;;  %v4281_v30 = vmul.f32 %v4279_v24, %v4275_v26 }
 0x88b   :  { %v4280_v31 = vmul.f32 %v4279_v24, %v4274_v29  ;;  %v4287_v33 = vadd.f32 %v4285_v27, %v4281_v30 }
 0x88d   :  { %v4286_v34 = vadd.f32 %v4285_v27, %v4280_v31  ;;  %4289 = vst.msk [vmem:[#allocation2 + $0x8] sm:$0xff] %vm231_vm0, %v4287_v33 }
 0x88f   :  { %4288 = vst.msk [vmem:[#allocation2] sm:$0xff] %vm231_vm0, %v4286_v34 }
 0x890   :  { %4961 = shalt.err (!%p4958_p4)
}
 0x891   :  { %s4978_s10 = smov 128   ;;  %s4979_s11 = smov 8  }
 0x892   :  { %4301 = dma.vmem_to_hbm [thread:$0]  %s4296_s9, 256, %s5733_s8, [#allocation3], %s4978_s10, %s4978_s10, %s4979_s11  }
 0x893   :  { %4970 = dma.done.wait [#allocation3], 256  }
 0x894   :  { %4971 = vsyncadd [#allocation3], 4294967040 }
 0x895   :  { %4305 = vsyncpa [#allocation3], 1 }

</bundles_post_ra>
